<compile_context>
chip_gen: v6e
topology: v6e:2x2x1
jax: 0.10.0
libtpu: 0.0.40
codegen_flags: <defaults>
</compile_context>

<pallas_src>
import functools

import jax
import jax.numpy as jnp
from jax.experimental import pallas as pl
from jax.experimental.pallas import tpu as pltpu

# ----------------------------- model hyper-params (small) --------------------
K = 32            # embedding size
HEADS = 4         # attention heads  (head dim = K // HEADS = 8)
DEPTH = 2         # number of transformer blocks
MAX_SEQ = 16      # max position embedding length
VOCAB = 64        # vocab size
NUM_CHARS = 64    # output classes
C_PAD = 128       # lane-dense padded head width
B = 2             # batch
T = 8             # sequence length
LN_EPS = 1e-5     # torch nn.LayerNorm default

# packed per-layer vector rows stored in a (DEPTH, 8, 4K) operand
_ROW_BO, _ROW_G1, _ROW_B1, _ROW_BF1, _ROW_BF2, _ROW_G2, _ROW_B2 = range(7)


# ----------------------------- Pallas kernel ---------------------------------
def _layernorm(x, g, b):
    mu = jnp.mean(x, axis=-1, keepdims=True)
    var = jnp.mean((x - mu) ** 2, axis=-1, keepdims=True)
    return (x - mu) * jax.lax.rsqrt(var + LN_EPS) * g + b


def fused_gen_transformer_kernel(tok_ref, emb_ref, bias_ref, wqk_ref, wvo_ref,
                                 w1_ref, w2_ref, vec_ref, head_ref, o_ref,
                                 *, heads):
    """Whole model (embedding gather + DEPTH blocks + head + log_softmax).

    tok_ref:  (B, T)  int32 tokens, SMEM
    emb_ref:  (VOCAB+T, K)  token embedding rows then pos-emb rows 0..T-1
    bias_ref: (H*B*T, H*B*T)  additive mask: 0 if same (head,batch) block AND
              causal (k<=q), else -1e30
    wqk_ref:  (DEPTH, K, 2K)  Q (pre-scaled by 1/sqrt(d)) and K projections
    wvo_ref:  (DEPTH, K, H*K) per-head folded Wv_h @ Wo_h
    w1_ref:   (DEPTH, K, 4K)  FF up-projection
    w2_ref:   (DEPTH, 4K, K)  FF down-projection
    vec_ref:  (DEPTH, 8, 4K)  packed [bo, g1, b1, bf1, bf2, g2, b2, pad]
    head_ref: (K+1, C_PAD)    head weight rows 0..K-1 + bias row K (pads -1e30)
    o_ref:    (B, T, C_PAD)   log-probabilities (padded columns are junk)
    """
    batch, seq = tok_ref.shape
    n_emb, kk = emb_ref.shape
    vocab = n_emb - seq                       # augmented table = vocab + T rows
    depth = wqk_ref.shape[0]
    d = kk // heads
    bt = batch * seq

    # ---- fused embedding: "two-hot"(token, position) @ augmented table -------
    lane = jax.lax.broadcasted_iota(jnp.int32, (1, n_emb), 1)
    rows = []
    for b in range(batch):
        for t in range(seq):
            tid = tok_ref[b, t]                               # SMEM scalar
            rows.append(((lane == tid) | (lane == vocab + t)).astype(jnp.float32))
    twohot = jnp.concatenate(rows, axis=0)                    # (BT, VOCAB+T)
    x2 = jnp.dot(twohot, emb_ref[...],
                 preferred_element_type=jnp.float32)          # (BT, K) = tok+pos

    # ---- combined causal + block-diagonal additive mask, loaded once ---------
    attn_bias = bias_ref[...]                                 # (H*BT, H*BT)

    for layer in range(depth):                                # static unroll
        wqk = wqk_ref[layer]                                  # (K, 2K)
        wvo = wvo_ref[layer]                                  # (K, H*K)
        w1 = w1_ref[layer]                                    # (K, 4K)
        w2 = w2_ref[layer]                                    # (4K, K)
        vecs = vec_ref[layer]                                 # (8, 4K)
        bo = vecs[_ROW_BO:_ROW_BO + 1, :kk]
        g1 = vecs[_ROW_G1:_ROW_G1 + 1, :kk]
        b1 = vecs[_ROW_B1:_ROW_B1 + 1, :kk]
        bf1 = vecs[_ROW_BF1:_ROW_BF1 + 1, :]
        bf2 = vecs[_ROW_BF2:_ROW_BF2 + 1, :kk]
        g2 = vecs[_ROW_G2:_ROW_G2 + 1, :kk]
        b2 = vecs[_ROW_B2:_ROW_B2 + 1, :kk]

        # projections: Q/K fused (scale folded into Q), V already folded with Wo
        qk = jnp.dot(x2, wqk, preferred_element_type=jnp.float32)   # (BT, 2K)
        xvo = jnp.dot(x2, wvo, preferred_element_type=jnp.float32)  # (BT, H*K)

        # stack heads along SUBLANES (row blocks), no lane concat on the merge
        q_big = jnp.concatenate(
            [qk[:, h * d:(h + 1) * d] for h in range(heads)], axis=0)       # (H*BT, d)
        k_big = jnp.concatenate(
            [qk[:, kk + h * d:kk + (h + 1) * d] for h in range(heads)], axis=0)
        vo_big = jnp.concatenate(
            [xvo[:, h * kk:(h + 1) * kk] for h in range(heads)], axis=0)    # (H*BT, K)

        # block-diagonal attention: ONE score matmul + ONE P@V matmul
        s = jnp.einsum("ad,bd->ab", q_big, k_big,
                       preferred_element_type=jnp.float32)    # (H*BT, H*BT)
        s = s + attn_bias
        m = jnp.max(s, axis=-1, keepdims=True)
        p = jnp.exp(s - m)
        p = p * pl.reciprocal(jnp.sum(p, axis=-1, keepdims=True), approx=True)
        o_big = jnp.dot(p, vo_big, preferred_element_type=jnp.float32)      # (H*BT, K)

        # head merge = sum of per-head sublane blocks (Wo already applied)
        attn = o_big[0:bt, :]
        for h in range(1, heads):
            attn = attn + o_big[h * bt:(h + 1) * bt, :]
        attn = attn + bo

        y = _layernorm(attn + x2, g1, b1)
        h1 = jnp.maximum(
            jnp.dot(y, w1, preferred_element_type=jnp.float32) + bf1, 0.0)
        ff = jnp.dot(h1, w2, preferred_element_type=jnp.float32) + bf2
        x2 = _layernorm(ff + y, g2, b2)

    # ---- output head (lane-dense, padded to C_PAD) + log_softmax -------------
    wb = head_ref[...]                                        # (K+1, C_PAD)
    logits = jnp.dot(x2, wb[:kk, :],
                     preferred_element_type=jnp.float32) + wb[kk:kk + 1, :]
    mx = jnp.max(logits, axis=-1, keepdims=True)
    lse = jnp.log(jnp.sum(jnp.exp(logits - mx), axis=-1, keepdims=True))
    logp = logits - mx - lse                                  # (BT, C_PAD)
    o_ref[...] = logp.reshape(batch, seq, -1).astype(o_ref.dtype)


# ----------------------------- wrapper ---------------------------------------
def fused_forward(tokens, ops):
    kern = functools.partial(fused_gen_transformer_kernel, heads=HEADS)
    vspec = pl.BlockSpec(memory_space=pltpu.MemorySpace.VMEM)
    sspec = pl.BlockSpec(memory_space=pltpu.MemorySpace.SMEM)
    # single invocation, no grid: every operand (~150 KB total) is copied whole
    # into VMEM/SMEM and stays resident for the full forward pass.
    return pl.pallas_call(
        kern,
        out_shape=jax.ShapeDtypeStruct((B, T, C_PAD), jnp.float32),
        in_specs=[sspec] + [vspec] * 8,
        out_specs=vspec,
    )(tokens, ops["emb_aug"], ops["attn_bias"], ops["wqk"], ops["wvo"],
      ops["w1"], ops["w2"], ops["vecs"], ops["head"])


@jax.jit
def gen_transformer_forward(tokens, ops):
    logp = fused_forward(tokens, ops)          # (B, T, C_PAD)
    return logp[:, :, :NUM_CHARS]              # drop the lane padding


# ----------------------------- parameters ------------------------------------
def init_params(key):
    """Raw, PyTorch-module-like parameters (used by the pure-JAX reference)."""
    kff = 4 * K
    ks = jax.random.split(key, 17)

    def nrm(k, shape, scale=0.05):
        return scale * jax.random.normal(k, shape, dtype=jnp.float32)

    return {
        "token_emb": nrm(ks[0], (VOCAB, K), 1.0),
        "pos_emb": nrm(ks[1], (MAX_SEQ, K), 1.0),
        "wq": nrm(ks[2], (DEPTH, K, K)),
        "wk": nrm(ks[3], (DEPTH, K, K)),
        "wv": nrm(ks[4], (DEPTH, K, K)),
        "wo": nrm(ks[5], (DEPTH, K, K)),
        "attn_bo": nrm(ks[6], (DEPTH, K), 0.02),
        "ln1_g": 1.0 + nrm(ks[7], (DEPTH, K), 0.02),
        "ln1_b": nrm(ks[8], (DEPTH, K), 0.02),
        "ln2_g": 1.0 + nrm(ks[9], (DEPTH, K), 0.02),
        "ln2_b": nrm(ks[10], (DEPTH, K), 0.02),
        "w1": nrm(ks[11], (DEPTH, K, kff)),
        "ff_b1": nrm(ks[12], (DEPTH, kff), 0.02),
        "w2": nrm(ks[13], (DEPTH, kff, K)),
        "ff_b2": nrm(ks[14], (DEPTH, K), 0.02),
        "head_w": nrm(ks[15], (K, NUM_CHARS)),
        "head_b": nrm(ks[16], (NUM_CHARS,), 0.02),
    }


def pack_operands(p):
    """One-time parameter transforms (folds) into the kernel operand layout."""
    d = K // HEADS
    kff = 4 * K

    # fold 1/sqrt(d) into the Q projection; fuse Q|K along lanes
    wq_scaled = p["wq"] * jnp.float32(float(d) ** -0.5)
    wqk = jnp.concatenate([wq_scaled, p["wk"]], axis=-1)             # (D, K, 2K)

    # fold Wo into V per head: wvo[..., h*K:(h+1)*K] = Wv_h @ Wo[h*d:(h+1)*d, :]
    wvo = jnp.concatenate(
        [jnp.einsum("lkd,ldm->lkm",
                    p["wv"][:, :, h * d:(h + 1) * d],
                    p["wo"][:, h * d:(h + 1) * d, :]) for h in range(HEADS)],
        axis=-1)                                                     # (D, K, H*K)

    # packed per-layer bias / LayerNorm vectors
    vecs = jnp.zeros((DEPTH, 8, kff), jnp.float32)
    vecs = vecs.at[:, _ROW_BO, :K].set(p["attn_bo"])
    vecs = vecs.at[:, _ROW_G1, :K].set(p["ln1_g"])
    vecs = vecs.at[:, _ROW_B1, :K].set(p["ln1_b"])
    vecs = vecs.at[:, _ROW_BF1, :].set(p["ff_b1"])
    vecs = vecs.at[:, _ROW_BF2, :K].set(p["ff_b2"])
    vecs = vecs.at[:, _ROW_G2, :K].set(p["ln2_g"])
    vecs = vecs.at[:, _ROW_B2, :K].set(p["ln2_b"])

    # lane-dense padded head: pad weight cols with 0, pad bias with -1e30 so the
    # padded logits exp to 0 under log_softmax.
    head = jnp.zeros((K + 1, C_PAD), jnp.float32)
    head = head.at[:K, :NUM_CHARS].set(p["head_w"])
    head = head.at[K, :NUM_CHARS].set(p["head_b"])
    head = head.at[K, NUM_CHARS:].set(-1e30)

    # augmented embedding table: token rows, then position rows 0..T-1
    emb_aug = jnp.concatenate([p["token_emb"], p["pos_emb"][:T]], axis=0)

    # combined causal + block-diagonal (same head & batch) additive mask
    zt = HEADS * B * T
    r = jnp.arange(zt)
    same_blk = (r[:, None] // T) == (r[None, :] // T)
    causal = (r[None, :] % T) <= (r[:, None] % T)
    attn_bias = jnp.where(same_blk & causal, 0.0, -1e30).astype(jnp.float32)

    return {"emb_aug": emb_aug, "attn_bias": attn_bias, "wqk": wqk, "wvo": wvo,
            "w1": p["w1"], "w2": p["w2"], "vecs": vecs, "head": head}


# ----------------------------- pure-JAX reference ----------------------------
def _ln_ref(x, g, b):
    mu = jnp.mean(x, axis=-1, keepdims=True)
    var = jnp.mean((x - mu) ** 2, axis=-1, keepdims=True)
    return (x - mu) * jax.lax.rsqrt(var + LN_EPS) * g + b


def reference_forward(tokens, p):
    tok = jnp.take(p["token_emb"], tokens, axis=0)                   # (B, T, K)
    pos = p["pos_emb"][: tokens.shape[1]][None, :, :]
    x = tok + pos
    b, t, k = x.shape
    d = k // HEADS
    causal = jnp.tril(jnp.ones((t, t), dtype=bool))
    for l in range(DEPTH):
        q = x @ p["wq"][l]
        kx = x @ p["wk"][l]
        v = x @ p["wv"][l]

        def split(a):
            return a.reshape(b, t, HEADS, d).transpose(0, 2, 1, 3)

        qh, kh, vh = split(q), split(kx), split(v)
        s = jnp.einsum("bhqd,bhkd->bhqk", qh, kh) / jnp.sqrt(jnp.float32(d))
        s = jnp.where(causal[None, None], s, -jnp.inf)
        a = jax.nn.softmax(s, axis=-1)
        o = jnp.einsum("bhqk,bhkd->bhqd", a, vh)
        o = o.transpose(0, 2, 1, 3).reshape(b, t, k)
        o = o @ p["wo"][l] + p["attn_bo"][l]
        x = _ln_ref(o + x, p["ln1_g"][l], p["ln1_b"][l])
        h1 = jax.nn.relu(x @ p["w1"][l] + p["ff_b1"][l])
        ff = h1 @ p["w2"][l] + p["ff_b2"][l]
        x = _ln_ref(ff + x, p["ln2_g"][l], p["ln2_b"][l])
    logits = x @ p["head_w"] + p["head_b"]
    return jax.nn.log_softmax(logits, axis=-1)


# ----------------------------- main -------------------------------------------
if __name__ == "__main__":
    key = jax.random.PRNGKey(0)
    pkey, xkey = jax.random.split(key)
    params = init_params(pkey)
    ops = pack_operands(params)
    tokens = jax.random.randint(xkey, (B, T), 0, VOCAB, dtype=jnp.int32)

    out = gen_transformer_forward(tokens, ops)
    out = jax.block_until_ready(out)

    assert out.shape == (B, T, NUM_CHARS), out.shape
    assert bool(jnp.all(jnp.isfinite(out)))
    # log_softmax rows must sum to ~1 in prob space
    assert bool(jnp.allclose(jnp.sum(jnp.exp(out), axis=-1), 1.0, atol=1e-4))

    # numerical check against the pure-JAX reference (approx softmax reciprocal
    # in the kernel -> loose absolute tolerance)
    with jax.default_matmul_precision("float32"):
        ref = reference_forward(tokens, params)
    err = float(jnp.max(jnp.abs(out - ref)))
    assert err < 3e-2, f"max abs error vs reference: {err}"

    print("KERNEL_OK")
</pallas_src>

<mosaic_0001>
module attributes {stable_mosaic.version = 11 : i64} {
  func.func @fused_gen_transformer_kernel(%arg0: memref<2x8xi32, #tpu.memory_space<smem>>, %arg1: memref<72x32xf32, #tpu.memory_space<vmem>>, %arg2: memref<64x64xf32, #tpu.memory_space<vmem>>, %arg3: memref<2x32x64xf32, #tpu.memory_space<vmem>>, %arg4: memref<2x32x128xf32, #tpu.memory_space<vmem>>, %arg5: memref<2x32x128xf32, #tpu.memory_space<vmem>>, %arg6: memref<2x128x32xf32, #tpu.memory_space<vmem>>, %arg7: memref<2x8x128xf32, #tpu.memory_space<vmem>>, %arg8: memref<33x128xf32, #tpu.memory_space<vmem>>, %arg9: memref<2x8x128xf32, #tpu.memory_space<vmem>>) attributes {dimension_semantics = [], scalar_prefetch = 0 : i64, scratch_operands = 0 : i64, tpu.core_type = #tpu.core_type<tc>} {
    %0 = tpu.iota {dimensions = array<i32: 1>} : vector<1x72xi32>
    %c0 = arith.constant 0 : index
    %c0_0 = arith.constant 0 : index
    %1 = memref.load %arg0[%c0, %c0_0] : memref<2x8xi32, #tpu.memory_space<smem>>
    %2 = vector.broadcast %1 : i32 to vector<1x72xi32>
    %3 = arith.cmpi eq, %0, %2 : vector<1x72xi32>
    %c64_i32 = arith.constant 64 : i32
    %4 = vector.broadcast %c64_i32 : i32 to vector<1x72xi32>
    %5 = arith.cmpi eq, %0, %4 : vector<1x72xi32>
    %6 = arith.ori %3, %5 : vector<1x72xi1>
    %7 = arith.extui %6 : vector<1x72xi1> to vector<1x72xi32>
    %8 = arith.sitofp %7 : vector<1x72xi32> to vector<1x72xf32>
    %c0_1 = arith.constant 0 : index
    %c1 = arith.constant 1 : index
    %9 = memref.load %arg0[%c0_1, %c1] : memref<2x8xi32, #tpu.memory_space<smem>>
    %10 = vector.broadcast %9 : i32 to vector<1x72xi32>
    %11 = arith.cmpi eq, %0, %10 : vector<1x72xi32>
    %c65_i32 = arith.constant 65 : i32
    %12 = vector.broadcast %c65_i32 : i32 to vector<1x72xi32>
    %13 = arith.cmpi eq, %0, %12 : vector<1x72xi32>
    %14 = arith.ori %11, %13 : vector<1x72xi1>
    %15 = arith.extui %14 : vector<1x72xi1> to vector<1x72xi32>
    %16 = arith.sitofp %15 : vector<1x72xi32> to vector<1x72xf32>
    %c0_2 = arith.constant 0 : index
    %c2 = arith.constant 2 : index
    %17 = memref.load %arg0[%c0_2, %c2] : memref<2x8xi32, #tpu.memory_space<smem>>
    %18 = vector.broadcast %17 : i32 to vector<1x72xi32>
    %19 = arith.cmpi eq, %0, %18 : vector<1x72xi32>
    %c66_i32 = arith.constant 66 : i32
    %20 = vector.broadcast %c66_i32 : i32 to vector<1x72xi32>
    %21 = arith.cmpi eq, %0, %20 : vector<1x72xi32>
    %22 = arith.ori %19, %21 : vector<1x72xi1>
    %23 = arith.extui %22 : vector<1x72xi1> to vector<1x72xi32>
    %24 = arith.sitofp %23 : vector<1x72xi32> to vector<1x72xf32>
    %c0_3 = arith.constant 0 : index
    %c3 = arith.constant 3 : index
    %25 = memref.load %arg0[%c0_3, %c3] : memref<2x8xi32, #tpu.memory_space<smem>>
    %26 = vector.broadcast %25 : i32 to vector<1x72xi32>
    %27 = arith.cmpi eq, %0, %26 : vector<1x72xi32>
    %c67_i32 = arith.constant 67 : i32
    %28 = vector.broadcast %c67_i32 : i32 to vector<1x72xi32>
    %29 = arith.cmpi eq, %0, %28 : vector<1x72xi32>
    %30 = arith.ori %27, %29 : vector<1x72xi1>
    %31 = arith.extui %30 : vector<1x72xi1> to vector<1x72xi32>
    %32 = arith.sitofp %31 : vector<1x72xi32> to vector<1x72xf32>
    %c0_4 = arith.constant 0 : index
    %c4 = arith.constant 4 : index
    %33 = memref.load %arg0[%c0_4, %c4] : memref<2x8xi32, #tpu.memory_space<smem>>
    %34 = vector.broadcast %33 : i32 to vector<1x72xi32>
    %35 = arith.cmpi eq, %0, %34 : vector<1x72xi32>
    %c68_i32 = arith.constant 68 : i32
    %36 = vector.broadcast %c68_i32 : i32 to vector<1x72xi32>
    %37 = arith.cmpi eq, %0, %36 : vector<1x72xi32>
    %38 = arith.ori %35, %37 : vector<1x72xi1>
    %39 = arith.extui %38 : vector<1x72xi1> to vector<1x72xi32>
    %40 = arith.sitofp %39 : vector<1x72xi32> to vector<1x72xf32>
    %c0_5 = arith.constant 0 : index
    %c5 = arith.constant 5 : index
    %41 = memref.load %arg0[%c0_5, %c5] : memref<2x8xi32, #tpu.memory_space<smem>>
    %42 = vector.broadcast %41 : i32 to vector<1x72xi32>
    %43 = arith.cmpi eq, %0, %42 : vector<1x72xi32>
    %c69_i32 = arith.constant 69 : i32
    %44 = vector.broadcast %c69_i32 : i32 to vector<1x72xi32>
    %45 = arith.cmpi eq, %0, %44 : vector<1x72xi32>
    %46 = arith.ori %43, %45 : vector<1x72xi1>
    %47 = arith.extui %46 : vector<1x72xi1> to vector<1x72xi32>
    %48 = arith.sitofp %47 : vector<1x72xi32> to vector<1x72xf32>
    %c0_6 = arith.constant 0 : index
    %c6 = arith.constant 6 : index
    %49 = memref.load %arg0[%c0_6, %c6] : memref<2x8xi32, #tpu.memory_space<smem>>
    %50 = vector.broadcast %49 : i32 to vector<1x72xi32>
    %51 = arith.cmpi eq, %0, %50 : vector<1x72xi32>
    %c70_i32 = arith.constant 70 : i32
    %52 = vector.broadcast %c70_i32 : i32 to vector<1x72xi32>
    %53 = arith.cmpi eq, %0, %52 : vector<1x72xi32>
    %54 = arith.ori %51, %53 : vector<1x72xi1>
    %55 = arith.extui %54 : vector<1x72xi1> to vector<1x72xi32>
    %56 = arith.sitofp %55 : vector<1x72xi32> to vector<1x72xf32>
    %c0_7 = arith.constant 0 : index
    %c7 = arith.constant 7 : index
    %57 = memref.load %arg0[%c0_7, %c7] : memref<2x8xi32, #tpu.memory_space<smem>>
    %58 = vector.broadcast %57 : i32 to vector<1x72xi32>
    %59 = arith.cmpi eq, %0, %58 : vector<1x72xi32>
    %c71_i32 = arith.constant 71 : i32
    %60 = vector.broadcast %c71_i32 : i32 to vector<1x72xi32>
    %61 = arith.cmpi eq, %0, %60 : vector<1x72xi32>
    %62 = arith.ori %59, %61 : vector<1x72xi1>
    %63 = arith.extui %62 : vector<1x72xi1> to vector<1x72xi32>
    %64 = arith.sitofp %63 : vector<1x72xi32> to vector<1x72xf32>
    %c1_8 = arith.constant 1 : index
    %c0_9 = arith.constant 0 : index
    %65 = memref.load %arg0[%c1_8, %c0_9] : memref<2x8xi32, #tpu.memory_space<smem>>
    %66 = vector.broadcast %65 : i32 to vector<1x72xi32>
    %67 = arith.cmpi eq, %0, %66 : vector<1x72xi32>
    %c64_i32_10 = arith.constant 64 : i32
    %68 = vector.broadcast %c64_i32_10 : i32 to vector<1x72xi32>
    %69 = arith.cmpi eq, %0, %68 : vector<1x72xi32>
    %70 = arith.ori %67, %69 : vector<1x72xi1>
    %71 = arith.extui %70 : vector<1x72xi1> to vector<1x72xi32>
    %72 = arith.sitofp %71 : vector<1x72xi32> to vector<1x72xf32>
    %c1_11 = arith.constant 1 : index
    %c1_12 = arith.constant 1 : index
    %73 = memref.load %arg0[%c1_11, %c1_12] : memref<2x8xi32, #tpu.memory_space<smem>>
    %74 = vector.broadcast %73 : i32 to vector<1x72xi32>
    %75 = arith.cmpi eq, %0, %74 : vector<1x72xi32>
    %c65_i32_13 = arith.constant 65 : i32
    %76 = vector.broadcast %c65_i32_13 : i32 to vector<1x72xi32>
    %77 = arith.cmpi eq, %0, %76 : vector<1x72xi32>
    %78 = arith.ori %75, %77 : vector<1x72xi1>
    %79 = arith.extui %78 : vector<1x72xi1> to vector<1x72xi32>
    %80 = arith.sitofp %79 : vector<1x72xi32> to vector<1x72xf32>
    %c1_14 = arith.constant 1 : index
    %c2_15 = arith.constant 2 : index
    %81 = memref.load %arg0[%c1_14, %c2_15] : memref<2x8xi32, #tpu.memory_space<smem>>
    %82 = vector.broadcast %81 : i32 to vector<1x72xi32>
    %83 = arith.cmpi eq, %0, %82 : vector<1x72xi32>
    %c66_i32_16 = arith.constant 66 : i32
    %84 = vector.broadcast %c66_i32_16 : i32 to vector<1x72xi32>
    %85 = arith.cmpi eq, %0, %84 : vector<1x72xi32>
    %86 = arith.ori %83, %85 : vector<1x72xi1>
    %87 = arith.extui %86 : vector<1x72xi1> to vector<1x72xi32>
    %88 = arith.sitofp %87 : vector<1x72xi32> to vector<1x72xf32>
    %c1_17 = arith.constant 1 : index
    %c3_18 = arith.constant 3 : index
    %89 = memref.load %arg0[%c1_17, %c3_18] : memref<2x8xi32, #tpu.memory_space<smem>>
    %90 = vector.broadcast %89 : i32 to vector<1x72xi32>
    %91 = arith.cmpi eq, %0, %90 : vector<1x72xi32>
    %c67_i32_19 = arith.constant 67 : i32
    %92 = vector.broadcast %c67_i32_19 : i32 to vector<1x72xi32>
    %93 = arith.cmpi eq, %0, %92 : vector<1x72xi32>
    %94 = arith.ori %91, %93 : vector<1x72xi1>
    %95 = arith.extui %94 : vector<1x72xi1> to vector<1x72xi32>
    %96 = arith.sitofp %95 : vector<1x72xi32> to vector<1x72xf32>
    %c1_20 = arith.constant 1 : index
    %c4_21 = arith.constant 4 : index
    %97 = memref.load %arg0[%c1_20, %c4_21] : memref<2x8xi32, #tpu.memory_space<smem>>
    %98 = vector.broadcast %97 : i32 to vector<1x72xi32>
    %99 = arith.cmpi eq, %0, %98 : vector<1x72xi32>
    %c68_i32_22 = arith.constant 68 : i32
    %100 = vector.broadcast %c68_i32_22 : i32 to vector<1x72xi32>
    %101 = arith.cmpi eq, %0, %100 : vector<1x72xi32>
    %102 = arith.ori %99, %101 : vector<1x72xi1>
    %103 = arith.extui %102 : vector<1x72xi1> to vector<1x72xi32>
    %104 = arith.sitofp %103 : vector<1x72xi32> to vector<1x72xf32>
    %c1_23 = arith.constant 1 : index
    %c5_24 = arith.constant 5 : index
    %105 = memref.load %arg0[%c1_23, %c5_24] : memref<2x8xi32, #tpu.memory_space<smem>>
    %106 = vector.broadcast %105 : i32 to vector<1x72xi32>
    %107 = arith.cmpi eq, %0, %106 : vector<1x72xi32>
    %c69_i32_25 = arith.constant 69 : i32
    %108 = vector.broadcast %c69_i32_25 : i32 to vector<1x72xi32>
    %109 = arith.cmpi eq, %0, %108 : vector<1x72xi32>
    %110 = arith.ori %107, %109 : vector<1x72xi1>
    %111 = arith.extui %110 : vector<1x72xi1> to vector<1x72xi32>
    %112 = arith.sitofp %111 : vector<1x72xi32> to vector<1x72xf32>
    %c1_26 = arith.constant 1 : index
    %c6_27 = arith.constant 6 : index
    %113 = memref.load %arg0[%c1_26, %c6_27] : memref<2x8xi32, #tpu.memory_space<smem>>
    %114 = vector.broadcast %113 : i32 to vector<1x72xi32>
    %115 = arith.cmpi eq, %0, %114 : vector<1x72xi32>
    %c70_i32_28 = arith.constant 70 : i32
    %116 = vector.broadcast %c70_i32_28 : i32 to vector<1x72xi32>
    %117 = arith.cmpi eq, %0, %116 : vector<1x72xi32>
    %118 = arith.ori %115, %117 : vector<1x72xi1>
    %119 = arith.extui %118 : vector<1x72xi1> to vector<1x72xi32>
    %120 = arith.sitofp %119 : vector<1x72xi32> to vector<1x72xf32>
    %c1_29 = arith.constant 1 : index
    %c7_30 = arith.constant 7 : index
    %121 = memref.load %arg0[%c1_29, %c7_30] : memref<2x8xi32, #tpu.memory_space<smem>>
    %122 = vector.broadcast %121 : i32 to vector<1x72xi32>
    %123 = arith.cmpi eq, %0, %122 : vector<1x72xi32>
    %c71_i32_31 = arith.constant 71 : i32
    %124 = vector.broadcast %c71_i32_31 : i32 to vector<1x72xi32>
    %125 = arith.cmpi eq, %0, %124 : vector<1x72xi32>
    %126 = arith.ori %123, %125 : vector<1x72xi1>
    %127 = arith.extui %126 : vector<1x72xi1> to vector<1x72xi32>
    %128 = arith.sitofp %127 : vector<1x72xi32> to vector<1x72xf32>
    %129 = tpu.concatenate %8, %16, %24, %32, %40, %48, %56, %64, %72, %80, %88, %96, %104, %112, %120, %128 in 0 : vector<1x72xf32>, vector<1x72xf32>, vector<1x72xf32>, vector<1x72xf32>, vector<1x72xf32>, vector<1x72xf32>, vector<1x72xf32>, vector<1x72xf32>, vector<1x72xf32>, vector<1x72xf32>, vector<1x72xf32>, vector<1x72xf32>, vector<1x72xf32>, vector<1x72xf32>, vector<1x72xf32>, vector<1x72xf32> -> vector<16x72xf32>
    %c0_32 = arith.constant 0 : index
    %c0_33 = arith.constant 0 : index
    %130 = vector.load %arg1[%c0_32, %c0_33] : memref<72x32xf32, #tpu.memory_space<vmem>>, vector<72x32xf32>
    %cst = arith.constant dense<0.000000e+00> : vector<16x32xf32>
    %131 = tpu.matmul %129, %130, %cst {dimension_numbers = #tpu.dot_dimension_numbers<[1], [0], [0], [1], [0, 0, 1, 1], [], []>} : vector<16x72xf32>, vector<72x32xf32>, vector<16x32xf32> -> vector<16x32xf32>
    %c0_34 = arith.constant 0 : index
    %c0_35 = arith.constant 0 : index
    %132 = vector.load %arg2[%c0_34, %c0_35] : memref<64x64xf32, #tpu.memory_space<vmem>>, vector<64x64xf32>
    %c0_36 = arith.constant 0 : index
    %c0_37 = arith.constant 0 : index
    %c0_38 = arith.constant 0 : index
    %133 = vector.load %arg3[%c0_36, %c0_37, %c0_38] : memref<2x32x64xf32, #tpu.memory_space<vmem>>, vector<1x32x64xf32>
    %134 = vector.shape_cast %133 : vector<1x32x64xf32> to vector<32x64xf32>
    %c0_39 = arith.constant 0 : index
    %c0_40 = arith.constant 0 : index
    %c0_41 = arith.constant 0 : index
    %135 = vector.load %arg4[%c0_39, %c0_40, %c0_41] : memref<2x32x128xf32, #tpu.memory_space<vmem>>, vector<1x32x128xf32>
    %136 = vector.shape_cast %135 : vector<1x32x128xf32> to vector<32x128xf32>
    %c0_42 = arith.constant 0 : index
    %c0_43 = arith.constant 0 : index
    %c0_44 = arith.constant 0 : index
    %137 = vector.load %arg5[%c0_42, %c0_43, %c0_44] : memref<2x32x128xf32, #tpu.memory_space<vmem>>, vector<1x32x128xf32>
    %138 = vector.shape_cast %137 : vector<1x32x128xf32> to vector<32x128xf32>
    %c0_45 = arith.constant 0 : index
    %c0_46 = arith.constant 0 : index
    %c0_47 = arith.constant 0 : index
    %139 = vector.load %arg6[%c0_45, %c0_46, %c0_47] : memref<2x128x32xf32, #tpu.memory_space<vmem>>, vector<1x128x32xf32>
    %140 = vector.shape_cast %139 : vector<1x128x32xf32> to vector<128x32xf32>
    %c0_48 = arith.constant 0 : index
    %c0_49 = arith.constant 0 : index
    %c0_50 = arith.constant 0 : index
    %141 = vector.load %arg7[%c0_48, %c0_49, %c0_50] : memref<2x8x128xf32, #tpu.memory_space<vmem>>, vector<1x8x128xf32>
    %142 = vector.shape_cast %141 : vector<1x8x128xf32> to vector<8x128xf32>
    %143 = vector.extract_strided_slice %142 {offsets = [0, 0], sizes = [1, 32], strides = [1, 1]} : vector<8x128xf32> to vector<1x32xf32>
    %144 = vector.extract_strided_slice %142 {offsets = [1, 0], sizes = [1, 32], strides = [1, 1]} : vector<8x128xf32> to vector<1x32xf32>
    %145 = vector.extract_strided_slice %142 {offsets = [2, 0], sizes = [1, 32], strides = [1, 1]} : vector<8x128xf32> to vector<1x32xf32>
    %146 = vector.extract_strided_slice %142 {offsets = [3, 0], sizes = [1, 128], strides = [1, 1]} : vector<8x128xf32> to vector<1x128xf32>
    %147 = vector.extract_strided_slice %142 {offsets = [4, 0], sizes = [1, 32], strides = [1, 1]} : vector<8x128xf32> to vector<1x32xf32>
    %148 = vector.extract_strided_slice %142 {offsets = [5, 0], sizes = [1, 32], strides = [1, 1]} : vector<8x128xf32> to vector<1x32xf32>
    %149 = vector.extract_strided_slice %142 {offsets = [6, 0], sizes = [1, 32], strides = [1, 1]} : vector<8x128xf32> to vector<1x32xf32>
    %cst_51 = arith.constant dense<0.000000e+00> : vector<16x64xf32>
    %150 = tpu.matmul %131, %134, %cst_51 {dimension_numbers = #tpu.dot_dimension_numbers<[1], [0], [0], [1], [0, 0, 1, 1], [], []>} : vector<16x32xf32>, vector<32x64xf32>, vector<16x64xf32> -> vector<16x64xf32>
    %cst_52 = arith.constant dense<0.000000e+00> : vector<16x128xf32>
    %151 = tpu.matmul %131, %136, %cst_52 {dimension_numbers = #tpu.dot_dimension_numbers<[1], [0], [0], [1], [0, 0, 1, 1], [], []>} : vector<16x32xf32>, vector<32x128xf32>, vector<16x128xf32> -> vector<16x128xf32>
    %152 = vector.extract_strided_slice %150 {offsets = [0, 0], sizes = [16, 8], strides = [1, 1]} : vector<16x64xf32> to vector<16x8xf32>
    %153 = vector.extract_strided_slice %150 {offsets = [0, 8], sizes = [16, 8], strides = [1, 1]} : vector<16x64xf32> to vector<16x8xf32>
    %154 = vector.extract_strided_slice %150 {offsets = [0, 16], sizes = [16, 8], strides = [1, 1]} : vector<16x64xf32> to vector<16x8xf32>
    %155 = vector.extract_strided_slice %150 {offsets = [0, 24], sizes = [16, 8], strides = [1, 1]} : vector<16x64xf32> to vector<16x8xf32>
    %156 = tpu.concatenate %152, %153, %154, %155 in 0 : vector<16x8xf32>, vector<16x8xf32>, vector<16x8xf32>, vector<16x8xf32> -> vector<64x8xf32>
    %157 = vector.extract_strided_slice %150 {offsets = [0, 32], sizes = [16, 8], strides = [1, 1]} : vector<16x64xf32> to vector<16x8xf32>
    %158 = vector.extract_strided_slice %150 {offsets = [0, 40], sizes = [16, 8], strides = [1, 1]} : vector<16x64xf32> to vector<16x8xf32>
    %159 = vector.extract_strided_slice %150 {offsets = [0, 48], sizes = [16, 8], strides = [1, 1]} : vector<16x64xf32> to vector<16x8xf32>
    %160 = vector.extract_strided_slice %150 {offsets = [0, 56], sizes = [16, 8], strides = [1, 1]} : vector<16x64xf32> to vector<16x8xf32>
    %161 = tpu.concatenate %157, %158, %159, %160 in 0 : vector<16x8xf32>, vector<16x8xf32>, vector<16x8xf32>, vector<16x8xf32> -> vector<64x8xf32>
    %162 = vector.extract_strided_slice %151 {offsets = [0, 0], sizes = [16, 32], strides = [1, 1]} : vector<16x128xf32> to vector<16x32xf32>
    %163 = vector.extract_strided_slice %151 {offsets = [0, 32], sizes = [16, 32], strides = [1, 1]} : vector<16x128xf32> to vector<16x32xf32>
    %164 = vector.extract_strided_slice %151 {offsets = [0, 64], sizes = [16, 32], strides = [1, 1]} : vector<16x128xf32> to vector<16x32xf32>
    %165 = vector.extract_strided_slice %151 {offsets = [0, 96], sizes = [16, 32], strides = [1, 1]} : vector<16x128xf32> to vector<16x32xf32>
    %166 = tpu.concatenate %162, %163, %164, %165 in 0 : vector<16x32xf32>, vector<16x32xf32>, vector<16x32xf32>, vector<16x32xf32> -> vector<64x32xf32>
    "tpu.trace_start"() <{level = 10 : i32, message = "ad,bd->ab"}> : () -> ()
    %cst_53 = arith.constant dense<0.000000e+00> : vector<64x64xf32>
    %167 = tpu.matmul %156, %161, %cst_53 {dimension_numbers = #tpu.dot_dimension_numbers<[1], [1], [0], [0], [0, 0, 1, 0], [], []>} : vector<64x8xf32>, vector<64x8xf32>, vector<64x64xf32> -> vector<64x64xf32>
    "tpu.trace_stop"() : () -> ()
    %168 = arith.addf %167, %132 : vector<64x64xf32>
    %cst_54 = arith.constant dense<0xFF800000> : vector<64xf32>
    %169 = vector.multi_reduction <maximumf>, %168, %cst_54 [1] : vector<64x64xf32> to vector<64xf32>
    %170 = vector.shape_cast %169 : vector<64xf32> to vector<64x1xf32>
    %171 = vector.broadcast %170 : vector<64x1xf32> to vector<64x64xf32>
    %172 = arith.subf %168, %171 : vector<64x64xf32>
    %173 = math.exp %172 : vector<64x64xf32>
    %cst_55 = arith.constant dense<0.000000e+00> : vector<64xf32>
    %174 = vector.multi_reduction <add>, %173, %cst_55 [1] : vector<64x64xf32> to vector<64xf32>
    %175 = vector.shape_cast %174 : vector<64xf32> to vector<64x1xf32>
    %176 = tpu.reciprocal %175 {approx = true} : vector<64x1xf32> -> vector<64x1xf32>
    %177 = vector.broadcast %176 : vector<64x1xf32> to vector<64x64xf32>
    %178 = arith.mulf %173, %177 : vector<64x64xf32>
    %cst_56 = arith.constant dense<0.000000e+00> : vector<64x32xf32>
    %179 = tpu.matmul %178, %166, %cst_56 {dimension_numbers = #tpu.dot_dimension_numbers<[1], [0], [0], [1], [0, 0, 1, 1], [], []>} : vector<64x64xf32>, vector<64x32xf32>, vector<64x32xf32> -> vector<64x32xf32>
    %180 = vector.extract_strided_slice %179 {offsets = [0, 0], sizes = [16, 32], strides = [1, 1]} : vector<64x32xf32> to vector<16x32xf32>
    %181 = vector.extract_strided_slice %179 {offsets = [16, 0], sizes = [16, 32], strides = [1, 1]} : vector<64x32xf32> to vector<16x32xf32>
    %182 = arith.addf %180, %181 : vector<16x32xf32>
    %183 = vector.extract_strided_slice %179 {offsets = [32, 0], sizes = [16, 32], strides = [1, 1]} : vector<64x32xf32> to vector<16x32xf32>
    %184 = arith.addf %182, %183 : vector<16x32xf32>
    %185 = vector.extract_strided_slice %179 {offsets = [48, 0], sizes = [16, 32], strides = [1, 1]} : vector<64x32xf32> to vector<16x32xf32>
    %186 = arith.addf %184, %185 : vector<16x32xf32>
    %187 = vector.broadcast %143 : vector<1x32xf32> to vector<16x32xf32>
    %188 = arith.addf %186, %187 : vector<16x32xf32>
    %189 = arith.addf %188, %131 : vector<16x32xf32>
    %cst_57 = arith.constant dense<0.000000e+00> : vector<16xf32>
    %190 = vector.multi_reduction <add>, %189, %cst_57 [1] : vector<16x32xf32> to vector<16xf32>
    %191 = vector.shape_cast %190 : vector<16xf32> to vector<16x1xf32>
    %cst_58 = arith.constant 3.200000e+01 : f32
    %192 = vector.broadcast %cst_58 : f32 to vector<16x1xf32>
    %193 = arith.divf %191, %192 : vector<16x1xf32>
    %194 = vector.broadcast %193 : vector<16x1xf32> to vector<16x32xf32>
    %195 = arith.subf %189, %194 : vector<16x32xf32>
    %196 = arith.mulf %195, %195 : vector<16x32xf32>
    %cst_59 = arith.constant dense<0.000000e+00> : vector<16xf32>
    %197 = vector.multi_reduction <add>, %196, %cst_59 [1] : vector<16x32xf32> to vector<16xf32>
    %198 = vector.shape_cast %197 : vector<16xf32> to vector<16x1xf32>
    %cst_60 = arith.constant 3.200000e+01 : f32
    %199 = vector.broadcast %cst_60 : f32 to vector<16x1xf32>
    %200 = arith.divf %198, %199 : vector<16x1xf32>
    %201 = vector.broadcast %193 : vector<16x1xf32> to vector<16x32xf32>
    %202 = arith.subf %189, %201 : vector<16x32xf32>
    %cst_61 = arith.constant 9.99999974E-6 : f32
    %203 = vector.broadcast %cst_61 : f32 to vector<16x1xf32>
    %204 = arith.addf %200, %203 : vector<16x1xf32>
    %205 = math.rsqrt %204 : vector<16x1xf32>
    %206 = vector.broadcast %205 : vector<16x1xf32> to vector<16x32xf32>
    %207 = arith.mulf %202, %206 : vector<16x32xf32>
    %208 = vector.broadcast %144 : vector<1x32xf32> to vector<16x32xf32>
    %209 = arith.mulf %207, %208 : vector<16x32xf32>
    %210 = vector.broadcast %145 : vector<1x32xf32> to vector<16x32xf32>
    %211 = arith.addf %209, %210 : vector<16x32xf32>
    %cst_62 = arith.constant dense<0.000000e+00> : vector<16x128xf32>
    %212 = tpu.matmul %211, %138, %cst_62 {dimension_numbers = #tpu.dot_dimension_numbers<[1], [0], [0], [1], [0, 0, 1, 1], [], []>} : vector<16x32xf32>, vector<32x128xf32>, vector<16x128xf32> -> vector<16x128xf32>
    %213 = vector.broadcast %146 : vector<1x128xf32> to vector<16x128xf32>
    %214 = arith.addf %212, %213 : vector<16x128xf32>
    %cst_63 = arith.constant 0.000000e+00 : f32
    %215 = vector.broadcast %cst_63 : f32 to vector<16x128xf32>
    %216 = arith.maximumf %214, %215 : vector<16x128xf32>
    %cst_64 = arith.constant dense<0.000000e+00> : vector<16x32xf32>
    %217 = tpu.matmul %216, %140, %cst_64 {dimension_numbers = #tpu.dot_dimension_numbers<[1], [0], [0], [1], [0, 0, 1, 1], [], []>} : vector<16x128xf32>, vector<128x32xf32>, vector<16x32xf32> -> vector<16x32xf32>
    %218 = vector.broadcast %147 : vector<1x32xf32> to vector<16x32xf32>
    %219 = arith.addf %217, %218 : vector<16x32xf32>
    %220 = arith.addf %219, %211 : vector<16x32xf32>
    %cst_65 = arith.constant dense<0.000000e+00> : vector<16xf32>
    %221 = vector.multi_reduction <add>, %220, %cst_65 [1] : vector<16x32xf32> to vector<16xf32>
    %222 = vector.shape_cast %221 : vector<16xf32> to vector<16x1xf32>
    %cst_66 = arith.constant 3.200000e+01 : f32
    %223 = vector.broadcast %cst_66 : f32 to vector<16x1xf32>
    %224 = arith.divf %222, %223 : vector<16x1xf32>
    %225 = vector.broadcast %224 : vector<16x1xf32> to vector<16x32xf32>
    %226 = arith.subf %220, %225 : vector<16x32xf32>
    %227 = arith.mulf %226, %226 : vector<16x32xf32>
    %cst_67 = arith.constant dense<0.000000e+00> : vector<16xf32>
    %228 = vector.multi_reduction <add>, %227, %cst_67 [1] : vector<16x32xf32> to vector<16xf32>
    %229 = vector.shape_cast %228 : vector<16xf32> to vector<16x1xf32>
    %cst_68 = arith.constant 3.200000e+01 : f32
    %230 = vector.broadcast %cst_68 : f32 to vector<16x1xf32>
    %231 = arith.divf %229, %230 : vector<16x1xf32>
    %232 = vector.broadcast %224 : vector<16x1xf32> to vector<16x32xf32>
    %233 = arith.subf %220, %232 : vector<16x32xf32>
    %cst_69 = arith.constant 9.99999974E-6 : f32
    %234 = vector.broadcast %cst_69 : f32 to vector<16x1xf32>
    %235 = arith.addf %231, %234 : vector<16x1xf32>
    %236 = math.rsqrt %235 : vector<16x1xf32>
    %237 = vector.broadcast %236 : vector<16x1xf32> to vector<16x32xf32>
    %238 = arith.mulf %233, %237 : vector<16x32xf32>
    %239 = vector.broadcast %148 : vector<1x32xf32> to vector<16x32xf32>
    %240 = arith.mulf %238, %239 : vector<16x32xf32>
    %241 = vector.broadcast %149 : vector<1x32xf32> to vector<16x32xf32>
    %242 = arith.addf %240, %241 : vector<16x32xf32>
    %c1_70 = arith.constant 1 : index
    %c0_71 = arith.constant 0 : index
    %c0_72 = arith.constant 0 : index
    %243 = vector.load %arg3[%c1_70, %c0_71, %c0_72] : memref<2x32x64xf32, #tpu.memory_space<vmem>>, vector<1x32x64xf32>
    %244 = vector.shape_cast %243 : vector<1x32x64xf32> to vector<32x64xf32>
    %c1_73 = arith.constant 1 : index
    %c0_74 = arith.constant 0 : index
    %c0_75 = arith.constant 0 : index
    %245 = vector.load %arg4[%c1_73, %c0_74, %c0_75] : memref<2x32x128xf32, #tpu.memory_space<vmem>>, vector<1x32x128xf32>
    %246 = vector.shape_cast %245 : vector<1x32x128xf32> to vector<32x128xf32>
    %c1_76 = arith.constant 1 : index
    %c0_77 = arith.constant 0 : index
    %c0_78 = arith.constant 0 : index
    %247 = vector.load %arg5[%c1_76, %c0_77, %c0_78] : memref<2x32x128xf32, #tpu.memory_space<vmem>>, vector<1x32x128xf32>
    %248 = vector.shape_cast %247 : vector<1x32x128xf32> to vector<32x128xf32>
    %c1_79 = arith.constant 1 : index
    %c0_80 = arith.constant 0 : index
    %c0_81 = arith.constant 0 : index
    %249 = vector.load %arg6[%c1_79, %c0_80, %c0_81] : memref<2x128x32xf32, #tpu.memory_space<vmem>>, vector<1x128x32xf32>
    %250 = vector.shape_cast %249 : vector<1x128x32xf32> to vector<128x32xf32>
    %c1_82 = arith.constant 1 : index
    %c0_83 = arith.constant 0 : index
    %c0_84 = arith.constant 0 : index
    %251 = vector.load %arg7[%c1_82, %c0_83, %c0_84] : memref<2x8x128xf32, #tpu.memory_space<vmem>>, vector<1x8x128xf32>
    %252 = vector.shape_cast %251 : vector<1x8x128xf32> to vector<8x128xf32>
    %253 = vector.extract_strided_slice %252 {offsets = [0, 0], sizes = [1, 32], strides = [1, 1]} : vector<8x128xf32> to vector<1x32xf32>
    %254 = vector.extract_strided_slice %252 {offsets = [1, 0], sizes = [1, 32], strides = [1, 1]} : vector<8x128xf32> to vector<1x32xf32>
    %255 = vector.extract_strided_slice %252 {offsets = [2, 0], sizes = [1, 32], strides = [1, 1]} : vector<8x128xf32> to vector<1x32xf32>
    %256 = vector.extract_strided_slice %252 {offsets = [3, 0], sizes = [1, 128], strides = [1, 1]} : vector<8x128xf32> to vector<1x128xf32>
    %257 = vector.extract_strided_slice %252 {offsets = [4, 0], sizes = [1, 32], strides = [1, 1]} : vector<8x128xf32> to vector<1x32xf32>
    %258 = vector.extract_strided_slice %252 {offsets = [5, 0], sizes = [1, 32], strides = [1, 1]} : vector<8x128xf32> to vector<1x32xf32>
    %259 = vector.extract_strided_slice %252 {offsets = [6, 0], sizes = [1, 32], strides = [1, 1]} : vector<8x128xf32> to vector<1x32xf32>
    %cst_85 = arith.constant dense<0.000000e+00> : vector<16x64xf32>
    %260 = tpu.matmul %242, %244, %cst_85 {dimension_numbers = #tpu.dot_dimension_numbers<[1], [0], [0], [1], [0, 0, 1, 1], [], []>} : vector<16x32xf32>, vector<32x64xf32>, vector<16x64xf32> -> vector<16x64xf32>
    %cst_86 = arith.constant dense<0.000000e+00> : vector<16x128xf32>
    %261 = tpu.matmul %242, %246, %cst_86 {dimension_numbers = #tpu.dot_dimension_numbers<[1], [0], [0], [1], [0, 0, 1, 1], [], []>} : vector<16x32xf32>, vector<32x128xf32>, vector<16x128xf32> -> vector<16x128xf32>
    %262 = vector.extract_strided_slice %260 {offsets = [0, 0], sizes = [16, 8], strides = [1, 1]} : vector<16x64xf32> to vector<16x8xf32>
    %263 = vector.extract_strided_slice %260 {offsets = [0, 8], sizes = [16, 8], strides = [1, 1]} : vector<16x64xf32> to vector<16x8xf32>
    %264 = vector.extract_strided_slice %260 {offsets = [0, 16], sizes = [16, 8], strides = [1, 1]} : vector<16x64xf32> to vector<16x8xf32>
    %265 = vector.extract_strided_slice %260 {offsets = [0, 24], sizes = [16, 8], strides = [1, 1]} : vector<16x64xf32> to vector<16x8xf32>
    %266 = tpu.concatenate %262, %263, %264, %265 in 0 : vector<16x8xf32>, vector<16x8xf32>, vector<16x8xf32>, vector<16x8xf32> -> vector<64x8xf32>
    %267 = vector.extract_strided_slice %260 {offsets = [0, 32], sizes = [16, 8], strides = [1, 1]} : vector<16x64xf32> to vector<16x8xf32>
    %268 = vector.extract_strided_slice %260 {offsets = [0, 40], sizes = [16, 8], strides = [1, 1]} : vector<16x64xf32> to vector<16x8xf32>
    %269 = vector.extract_strided_slice %260 {offsets = [0, 48], sizes = [16, 8], strides = [1, 1]} : vector<16x64xf32> to vector<16x8xf32>
    %270 = vector.extract_strided_slice %260 {offsets = [0, 56], sizes = [16, 8], strides = [1, 1]} : vector<16x64xf32> to vector<16x8xf32>
    %271 = tpu.concatenate %267, %268, %269, %270 in 0 : vector<16x8xf32>, vector<16x8xf32>, vector<16x8xf32>, vector<16x8xf32> -> vector<64x8xf32>
    %272 = vector.extract_strided_slice %261 {offsets = [0, 0], sizes = [16, 32], strides = [1, 1]} : vector<16x128xf32> to vector<16x32xf32>
    %273 = vector.extract_strided_slice %261 {offsets = [0, 32], sizes = [16, 32], strides = [1, 1]} : vector<16x128xf32> to vector<16x32xf32>
    %274 = vector.extract_strided_slice %261 {offsets = [0, 64], sizes = [16, 32], strides = [1, 1]} : vector<16x128xf32> to vector<16x32xf32>
    %275 = vector.extract_strided_slice %261 {offsets = [0, 96], sizes = [16, 32], strides = [1, 1]} : vector<16x128xf32> to vector<16x32xf32>
    %276 = tpu.concatenate %272, %273, %274, %275 in 0 : vector<16x32xf32>, vector<16x32xf32>, vector<16x32xf32>, vector<16x32xf32> -> vector<64x32xf32>
    "tpu.trace_start"() <{level = 10 : i32, message = "ad,bd->ab"}> : () -> ()
    %cst_87 = arith.constant dense<0.000000e+00> : vector<64x64xf32>
    %277 = tpu.matmul %266, %271, %cst_87 {dimension_numbers = #tpu.dot_dimension_numbers<[1], [1], [0], [0], [0, 0, 1, 0], [], []>} : vector<64x8xf32>, vector<64x8xf32>, vector<64x64xf32> -> vector<64x64xf32>
    "tpu.trace_stop"() : () -> ()
    %278 = arith.addf %277, %132 : vector<64x64xf32>
    %cst_88 = arith.constant dense<0xFF800000> : vector<64xf32>
    %279 = vector.multi_reduction <maximumf>, %278, %cst_88 [1] : vector<64x64xf32> to vector<64xf32>
    %280 = vector.shape_cast %279 : vector<64xf32> to vector<64x1xf32>
    %281 = vector.broadcast %280 : vector<64x1xf32> to vector<64x64xf32>
    %282 = arith.subf %278, %281 : vector<64x64xf32>
    %283 = math.exp %282 : vector<64x64xf32>
    %cst_89 = arith.constant dense<0.000000e+00> : vector<64xf32>
    %284 = vector.multi_reduction <add>, %283, %cst_89 [1] : vector<64x64xf32> to vector<64xf32>
    %285 = vector.shape_cast %284 : vector<64xf32> to vector<64x1xf32>
    %286 = tpu.reciprocal %285 {approx = true} : vector<64x1xf32> -> vector<64x1xf32>
    %287 = vector.broadcast %286 : vector<64x1xf32> to vector<64x64xf32>
    %288 = arith.mulf %283, %287 : vector<64x64xf32>
    %cst_90 = arith.constant dense<0.000000e+00> : vector<64x32xf32>
    %289 = tpu.matmul %288, %276, %cst_90 {dimension_numbers = #tpu.dot_dimension_numbers<[1], [0], [0], [1], [0, 0, 1, 1], [], []>} : vector<64x64xf32>, vector<64x32xf32>, vector<64x32xf32> -> vector<64x32xf32>
    %290 = vector.extract_strided_slice %289 {offsets = [0, 0], sizes = [16, 32], strides = [1, 1]} : vector<64x32xf32> to vector<16x32xf32>
    %291 = vector.extract_strided_slice %289 {offsets = [16, 0], sizes = [16, 32], strides = [1, 1]} : vector<64x32xf32> to vector<16x32xf32>
    %292 = arith.addf %290, %291 : vector<16x32xf32>
    %293 = vector.extract_strided_slice %289 {offsets = [32, 0], sizes = [16, 32], strides = [1, 1]} : vector<64x32xf32> to vector<16x32xf32>
    %294 = arith.addf %292, %293 : vector<16x32xf32>
    %295 = vector.extract_strided_slice %289 {offsets = [48, 0], sizes = [16, 32], strides = [1, 1]} : vector<64x32xf32> to vector<16x32xf32>
    %296 = arith.addf %294, %295 : vector<16x32xf32>
    %297 = vector.broadcast %253 : vector<1x32xf32> to vector<16x32xf32>
    %298 = arith.addf %296, %297 : vector<16x32xf32>
    %299 = arith.addf %298, %242 : vector<16x32xf32>
    %cst_91 = arith.constant dense<0.000000e+00> : vector<16xf32>
    %300 = vector.multi_reduction <add>, %299, %cst_91 [1] : vector<16x32xf32> to vector<16xf32>
    %301 = vector.shape_cast %300 : vector<16xf32> to vector<16x1xf32>
    %cst_92 = arith.constant 3.200000e+01 : f32
    %302 = vector.broadcast %cst_92 : f32 to vector<16x1xf32>
    %303 = arith.divf %301, %302 : vector<16x1xf32>
    %304 = vector.broadcast %303 : vector<16x1xf32> to vector<16x32xf32>
    %305 = arith.subf %299, %304 : vector<16x32xf32>
    %306 = arith.mulf %305, %305 : vector<16x32xf32>
    %cst_93 = arith.constant dense<0.000000e+00> : vector<16xf32>
    %307 = vector.multi_reduction <add>, %306, %cst_93 [1] : vector<16x32xf32> to vector<16xf32>
    %308 = vector.shape_cast %307 : vector<16xf32> to vector<16x1xf32>
    %cst_94 = arith.constant 3.200000e+01 : f32
    %309 = vector.broadcast %cst_94 : f32 to vector<16x1xf32>
    %310 = arith.divf %308, %309 : vector<16x1xf32>
    %311 = vector.broadcast %303 : vector<16x1xf32> to vector<16x32xf32>
    %312 = arith.subf %299, %311 : vector<16x32xf32>
    %cst_95 = arith.constant 9.99999974E-6 : f32
    %313 = vector.broadcast %cst_95 : f32 to vector<16x1xf32>
    %314 = arith.addf %310, %313 : vector<16x1xf32>
    %315 = math.rsqrt %314 : vector<16x1xf32>
    %316 = vector.broadcast %315 : vector<16x1xf32> to vector<16x32xf32>
    %317 = arith.mulf %312, %316 : vector<16x32xf32>
    %318 = vector.broadcast %254 : vector<1x32xf32> to vector<16x32xf32>
    %319 = arith.mulf %317, %318 : vector<16x32xf32>
    %320 = vector.broadcast %255 : vector<1x32xf32> to vector<16x32xf32>
    %321 = arith.addf %319, %320 : vector<16x32xf32>
    %cst_96 = arith.constant dense<0.000000e+00> : vector<16x128xf32>
    %322 = tpu.matmul %321, %248, %cst_96 {dimension_numbers = #tpu.dot_dimension_numbers<[1], [0], [0], [1], [0, 0, 1, 1], [], []>} : vector<16x32xf32>, vector<32x128xf32>, vector<16x128xf32> -> vector<16x128xf32>
    %323 = vector.broadcast %256 : vector<1x128xf32> to vector<16x128xf32>
    %324 = arith.addf %322, %323 : vector<16x128xf32>
    %cst_97 = arith.constant 0.000000e+00 : f32
    %325 = vector.broadcast %cst_97 : f32 to vector<16x128xf32>
    %326 = arith.maximumf %324, %325 : vector<16x128xf32>
    %cst_98 = arith.constant dense<0.000000e+00> : vector<16x32xf32>
    %327 = tpu.matmul %326, %250, %cst_98 {dimension_numbers = #tpu.dot_dimension_numbers<[1], [0], [0], [1], [0, 0, 1, 1], [], []>} : vector<16x128xf32>, vector<128x32xf32>, vector<16x32xf32> -> vector<16x32xf32>
    %328 = vector.broadcast %257 : vector<1x32xf32> to vector<16x32xf32>
    %329 = arith.addf %327, %328 : vector<16x32xf32>
    %330 = arith.addf %329, %321 : vector<16x32xf32>
    %cst_99 = arith.constant dense<0.000000e+00> : vector<16xf32>
    %331 = vector.multi_reduction <add>, %330, %cst_99 [1] : vector<16x32xf32> to vector<16xf32>
    %332 = vector.shape_cast %331 : vector<16xf32> to vector<16x1xf32>
    %cst_100 = arith.constant 3.200000e+01 : f32
    %333 = vector.broadcast %cst_100 : f32 to vector<16x1xf32>
    %334 = arith.divf %332, %333 : vector<16x1xf32>
    %335 = vector.broadcast %334 : vector<16x1xf32> to vector<16x32xf32>
    %336 = arith.subf %330, %335 : vector<16x32xf32>
    %337 = arith.mulf %336, %336 : vector<16x32xf32>
    %cst_101 = arith.constant dense<0.000000e+00> : vector<16xf32>
    %338 = vector.multi_reduction <add>, %337, %cst_101 [1] : vector<16x32xf32> to vector<16xf32>
    %339 = vector.shape_cast %338 : vector<16xf32> to vector<16x1xf32>
    %cst_102 = arith.constant 3.200000e+01 : f32
    %340 = vector.broadcast %cst_102 : f32 to vector<16x1xf32>
    %341 = arith.divf %339, %340 : vector<16x1xf32>
    %342 = vector.broadcast %334 : vector<16x1xf32> to vector<16x32xf32>
    %343 = arith.subf %330, %342 : vector<16x32xf32>
    %cst_103 = arith.constant 9.99999974E-6 : f32
    %344 = vector.broadcast %cst_103 : f32 to vector<16x1xf32>
    %345 = arith.addf %341, %344 : vector<16x1xf32>
    %346 = math.rsqrt %345 : vector<16x1xf32>
    %347 = vector.broadcast %346 : vector<16x1xf32> to vector<16x32xf32>
    %348 = arith.mulf %343, %347 : vector<16x32xf32>
    %349 = vector.broadcast %258 : vector<1x32xf32> to vector<16x32xf32>
    %350 = arith.mulf %348, %349 : vector<16x32xf32>
    %351 = vector.broadcast %259 : vector<1x32xf32> to vector<16x32xf32>
    %352 = arith.addf %350, %351 : vector<16x32xf32>
    %c0_104 = arith.constant 0 : index
    %c0_105 = arith.constant 0 : index
    %353 = vector.load %arg8[%c0_104, %c0_105] : memref<33x128xf32, #tpu.memory_space<vmem>>, vector<33x128xf32>
    %354 = vector.extract_strided_slice %353 {offsets = [0, 0], sizes = [32, 128], strides = [1, 1]} : vector<33x128xf32> to vector<32x128xf32>
    %cst_106 = arith.constant dense<0.000000e+00> : vector<16x128xf32>
    %355 = tpu.matmul %352, %354, %cst_106 {dimension_numbers = #tpu.dot_dimension_numbers<[1], [0], [0], [1], [0, 0, 1, 1], [], []>} : vector<16x32xf32>, vector<32x128xf32>, vector<16x128xf32> -> vector<16x128xf32>
    %356 = vector.extract_strided_slice %353 {offsets = [32, 0], sizes = [1, 128], strides = [1, 1]} : vector<33x128xf32> to vector<1x128xf32>
    %357 = vector.broadcast %356 : vector<1x128xf32> to vector<16x128xf32>
    %358 = arith.addf %355, %357 : vector<16x128xf32>
    %cst_107 = arith.constant dense<0xFF800000> : vector<16xf32>
    %359 = vector.multi_reduction <maximumf>, %358, %cst_107 [1] : vector<16x128xf32> to vector<16xf32>
    %360 = vector.shape_cast %359 : vector<16xf32> to vector<16x1xf32>
    %361 = vector.broadcast %360 : vector<16x1xf32> to vector<16x128xf32>
    %362 = arith.subf %358, %361 : vector<16x128xf32>
    %363 = math.exp %362 : vector<16x128xf32>
    %cst_108 = arith.constant dense<0.000000e+00> : vector<16xf32>
    %364 = vector.multi_reduction <add>, %363, %cst_108 [1] : vector<16x128xf32> to vector<16xf32>
    %365 = vector.shape_cast %364 : vector<16xf32> to vector<16x1xf32>
    %366 = math.log %365 : vector<16x1xf32>
    %367 = vector.broadcast %360 : vector<16x1xf32> to vector<16x128xf32>
    %368 = arith.subf %358, %367 : vector<16x128xf32>
    %369 = vector.broadcast %366 : vector<16x1xf32> to vector<16x128xf32>
    %370 = arith.subf %368, %369 : vector<16x128xf32>
    %371 = vector.shape_cast %370 : vector<16x128xf32> to vector<2x8x128xf32>
    %c0_109 = arith.constant 0 : index
    %c0_110 = arith.constant 0 : index
    %c0_111 = arith.constant 0 : index
    %372 = vector.load %arg9[%c0_109, %c0_110, %c0_111] : memref<2x8x128xf32, #tpu.memory_space<vmem>>, vector<2x8x128xf32>
    tpu.vector_store %arg9[%c0_109, %c0_110, %c0_111], %371 {strides = array<i32>} : memref<2x8x128xf32, #tpu.memory_space<vmem>>, vector<2x8x128xf32>,
    return
  }
}

</mosaic_0001>

<bundles_post_ra>
// kernel: gen_transformer_forward.1
= control target key start
LH: loop header
LB: loop body
LE: loop exit
PB: predicated region body
PF: predicated region fallthrough
CT: control target
= control target key end

     0   :  { %14 = vsyncpa [#allocation4], 0  ;;  %s3602_s0 = inlined_call_operand.vmem [shape: s32[2,8], index: 0, kind: input, shape index: {}]   ;;  %s3603_s1 = inlined_call_operand.vmem [shape: f32[72,32], index: 1, kind: input, shape index: {}]   ;;  %s3604_s2 = inlined_call_operand.vmem [shape: f32[64,64], index: 2, kind: input, shape index: {}]   ;;  %s3605_s3 = inlined_call_operand.vmem [shape: f32[2,32,64], index: 3, kind: input, shape index: {}]   ;;  %s3606_s4 = inlined_call_operand.vmem [shape: f32[2,32,128], index: 4, kind: input, shape index: {}]   ;;  %s3607_s5 = inlined_call_operand.vmem [shape: f32[2,32,128], index: 5, kind: input, shape index: {}]   ;;  %s3608_s6 = inlined_call_operand.vmem [shape: f32[2,128,32], index: 6, kind: input, shape index: {}]   ;;  %s3609_s7 = inlined_call_operand.vmem [shape: f32[2,8,128], index: 7, kind: input, shape index: {}]   ;;  %s3610_s8 = inlined_call_operand.vmem [shape: f32[33,128], index: 8, kind: input, shape index: {}]   ;;  %s3611_s9 = inlined_call_operand.hbm [shape: f32[2,8,128], index: 9, kind: output, shape index: {}]  }
   0x1   :  { %15 = vsyncpa [#allocation3], 0  ;;  %s22_s11 = sshll.u32 %s3602_s0, 4  ;;  %s23_s11 = int_to_ptr.vmem [resolvable:$true] %s22_s11 }
   0x2   :  { %s2761_s12 = scalar_lea.vmem %s23_s11, 32  ;;  %p2766_p1 = scmp.lt.s32.totalorder %s23_s11, %s23_s11 }
   0x3   :  { %p2762_p0 = scmp.ne.s32.totalorder %s23_s11, %s2761_s12  ;;  %p2767_p2 = scmp.lt.s32.totalorder %s2761_s12, %s2761_s12 }
   0x5   :  { %p2768_p3 = por %p2767_p2, %p2766_p1 }
   0x7   :  { %p2769_p4 = pnand %p2768_p3, %p2762_p0 }
   0x9   :  { %2772 = shalt.err (!%p2769_p4)
}
   0xa   :  { %s2797_s13 = smov [#allocation2]  }
   0xb   :  { %25 = dma.vmem_to_smem %s23_s11, 32, %s2797_s13, [#allocation4]  }
   0xc   :  { %2793 = dma.done.wait [#allocation4], 32  }
   0xd   :  { %2794 = vsyncadd [#allocation4], 4294967264 }
   0xe   :  { %45 = sfence }
   0xf   :  { %v181_v0 = vld [vmem:[%s3603_s1 + $0x40] sm:$0xff]  ;;  %v180_v1 = vld [vmem:[%s3603_s1 + $0x38] sm:$0xff]  ;;  %v46_v2 = vlaneseq  ;;  %s48_s0 = sld [smem:[#allocation2]]  ;;  %v179_v3 = vld [vmem:[%s3603_s1 + $0x30] sm:$0xff]  ;;  %vm152_vm0 = vcmask 1040384   ;;  %vm154_vm1 = vcmask 1041408  }
  0x10   :  { %2382 = vmatprep.subr.mxu0 %v181_v0  ;;  %s2867_s18 = sld [smem:[#allocation2 + $0x1]]  ;;  %v178_v5 = vld [vmem:[%s3603_s1 + $0x28] sm:$0xff]  ;;  %v177_v6 = vld [vmem:[%s3603_s1 + $0x20] sm:$0xff]  ;;  %vm3616_vm2 = vcmask 1042432   ;;  %vm3614_vm5 = vcmask 1043456   ;;  %v275_v8 = vld [vmem:[%s3605_s3 + $0x18] sm:$0xff] }
  0x11   :  { %2383 = vmatpush3.msra.mxu0 %v181_v0  ;;  %v2873_v4 = vand.u32 127, %v46_v2  ;;  %s2875_s21 = sld [smem:[#allocation2 + $0x2]]  ;;  %2403 = vmatprep.subr.mxu1 %v275_v8  ;;  %v274_v10 = vld [vmem:[%s3605_s3 + $0x10] sm:$0xff]  ;;  %v176_v11 = vld [vmem:[%s3603_s1 + $0x18] sm:$0xff]  ;;  %v273_v13 = vld [vmem:[%s3605_s3 + $0x8] sm:$0xff]  ;;  %v2798_v14 = vmov 0.0  }
  0x12   :  { %2384 = vmatprep.subr.mxu0 %v180_v1  ;;  %s2880_s24 = sld [smem:[#allocation2 + $0x3]]  ;;  %2404 = vmatpush3.msra.mxu1 %v275_v8  ;;  %v175_v17 = vld [vmem:[%s3603_s1 + $0x10] sm:$0xff]  ;;  %v174_v23 = vld [vmem:[%s3603_s1 + $0x8] sm:$0xff]  ;;  %v173_v30 = vld [vmem:[%s3603_s1] sm:$0xff]  ;;  %s2800_s19 = smov 104  }
  0x13   :  { %2385 = vmatpush3.msra.mxu0 %v180_v1  ;;  %s2885_s27 = sld [smem:[#allocation2 + $0x4]]  ;;  %vm3612_vm3 = vcmp.eq.s32.totalorder %v2873_v4, 64  ;;  %vm3613_vm4 = vcmp.eq.s32.totalorder %v2873_v4, 65  ;;  %vm65_vm7 = vcmp.eq.s32.totalorder %v2873_v4, 66  ;;  %vm72_vm8 = vcmp.eq.s32.totalorder %v2873_v4, 67  ;;  %2405 = vmatprep.subr.mxu1 %v274_v10  ;;  %v272_v61 = vld [vmem:[%s3605_s3] sm:$0xff] }
  0x14   :  { %2386 = vmatprep.subr.mxu0 %v179_v3  ;;  %s2889_s28 = sld [smem:[#allocation2 + $0x5]]  ;;  %vm79_vm9 = vcmp.eq.s32.totalorder %v2873_v4, 68  ;;  %vm3617_vm11 = vcmp.eq.s32.totalorder %v2873_v4, 69  ;;  %vm3615_vm12 = vcmp.eq.s32.totalorder %v2873_v4, 70  ;;  %2406 = vmatpush3.msra.mxu1 %v274_v10  ;;  %v279_v62 = vld [vmem:[%s3606_s4 + $0x18] sm:$0xff]  ;;  %v278_v1 = vld [vmem:[%s3606_s4 + $0x10] sm:$0xff] }
  0x15   :  { %2387 = vmatpush3.msra.mxu0 %v179_v3  ;;  %v49_v7 = vstv %s48_s0  ;;  %s2894_s29 = sld [smem:[#allocation2 + $0x6]]  ;;  %2407 = vmatprep.subr.mxu1 %v273_v13  ;;  %v277_v3 = vld [vmem:[%s3606_s4 + $0x8] sm:$0xff]  ;;  %s2801_s20 = smov 120  }
  0x16   :  { %2388 = vmatprep.subr.mxu0 %v178_v5  ;;  %vm50_vm10 = vcmp.eq.s32.totalorder %v2873_v4, %v49_v7  ;;  %v56_v9 = vstv %s2867_s18  ;;  %s2903_s11 = sld [smem:[#allocation2 + $0x7]]  ;;  %2408 = vmatpush3.msra.mxu1 %v273_v13  ;;  %s2803_s14 = smov 32  }
  0x17   :  { %2389 = vmatpush3.msra.mxu0 %v178_v5  ;;  %vm52_vm13 = vmor %vm50_vm10, %vm3612_vm3  ;;  %vm57_vm14 = vcmp.eq.s32.totalorder %v2873_v4, %v56_v9  ;;  %v63_v12 = vstv %s2875_s21  ;;  %s2916_s16 = sld [smem:[#allocation2 + $0x80]]  ;;  %2409 = vmatprep.subr.mxu1 %v272_v61  ;;  %s2804_s15 = smov 64  }
  0x18   :  { %2390 = vmatprep.subr.mxu0 %v177_v6  ;;  %v2104_v15 = vsel %vm52_vm13, 1.0, %v2798_v14  ;;  %vm59_vm10 = vmor %vm57_vm14, %vm3613_vm4  ;;  %vm64_vm3 = vcmp.eq.s32.totalorder %v2873_v4, %v63_v12  ;;  %v70_v16 = vstv %s2880_s24  ;;  %s2926_s18 = sld [smem:[#allocation2 + $0x81]]  ;;  %vm182_vm4 = vcmask 588800   ;;  %2410 = vmatpush3.msra.mxu1 %v272_v61 }
  0x19   :  { %2391 = vmatpush3.msra.mxu0 %v177_v6  ;;  %v2106_v18 = vsel %vm59_vm10, 1.0, %v2798_v14  ;;  %vm66_vm13 = vmor %vm64_vm3, %vm65_vm7  ;;  %vm71_vm14 = vcmp.eq.s32.totalorder %v2873_v4, %v70_v16  ;;  %v77_v19 = vstv %s2885_s27  ;;  %s2936_s21 = sld [smem:[#allocation2 + $0x82]]  ;;  %2414 = vmatprep.subr.mxu1 %v279_v62 }
  0x1a   :  { %2392 = vmatprep.subr.mxu0 %v176_v11  ;;  %v2108_v20 = vsel %vm66_vm13, 1.0, %v2798_v14  ;;  %vm73_vm6 = vmor %vm71_vm14, %vm72_vm8  ;;  %vm78_vm15 = vcmp.eq.s32.totalorder %v2873_v4, %v77_v19  ;;  %v84_v21 = vstv %s2889_s28  ;;  %s2943_s22 = sld [smem:[#allocation2 + $0x83]]  ;;  %v153_v22 = vsel %vm152_vm0, %v2104_v15, %v2106_v18 }
  0x1b   :  { %2393 = vmatpush3.msra.mxu0 %v176_v11  ;;  %v2110_v24 = vsel %vm73_vm6, 1.0, %v2798_v14  ;;  %vm80_vm3 = vmor %vm78_vm15, %vm79_vm9  ;;  %vm85_vm10 = vcmp.eq.s32.totalorder %v2873_v4, %v84_v21  ;;  %v91_v25 = vstv %s2894_s29  ;;  %s2954_s25 = sld [smem:[#allocation2 + $0x84]]  ;;  %v155_v26 = vsel %vm154_vm1, %v153_v22, %v2108_v20 }
  0x1c   :  { %2394 = vmatprep.subr.mxu0 %v175_v17  ;;  %v2112_v27 = vsel %vm80_vm3, 1.0, %v2798_v14  ;;  %vm87_vm13 = vmor %vm85_vm10, %vm3617_vm11  ;;  %vm92_vm6 = vcmp.eq.s32.totalorder %v2873_v4, %v91_v25  ;;  %v98_v28 = vstv %s2903_s11  ;;  %s2962_s26 = sld [smem:[#allocation2 + $0x85]]  ;;  %v157_v29 = vsel %vm3616_vm2, %v155_v26, %v2110_v24  ;;  %v3110_v25 = vld [vmem:[%s3604_s2] sm:$0xff] }
  0x1d   :  { %2395 = vmatpush3.msra.mxu0 %v175_v17  ;;  %v2114_v31 = vsel %vm87_vm13, 1.0, %v2798_v14  ;;  %vm94_vm15 = vmor %vm92_vm6, %vm3615_vm12  ;;  %vm99_vm14 = vcmp.eq.s32.totalorder %v2873_v4, %v98_v28  ;;  %v105_v32 = vstv %s2916_s16  ;;  %s2973_s29 = sld [smem:[#allocation2 + $0x86]]  ;;  %v159_v33 = vsel %vm3614_vm5, %v157_v29, %v2112_v27 }
  0x1e   :  { %2396 = vmatprep.subr.mxu0 %v174_v23  ;;  %v2116_v34 = vsel %vm94_vm15, 1.0, %v2798_v14  ;;  %vm3618_vm3 = vcmp.eq.s32.totalorder %v2873_v4, 71  ;;  %vm106_vm13 = vcmp.eq.s32.totalorder %v2873_v4, %v105_v32  ;;  %v111_v35 = vstv %s2926_s18  ;;  %s2981_s1 = sld [smem:[#allocation2 + $0x87]]  ;;  %s2799_s18 = smov 112  }
  0x1f   :  { %vm101_vm10 = vmor %vm99_vm14, %vm3618_vm3  ;;  %vm3619_vm6 = vcmask 1044480   ;;  %2397 = vmatpush3.msra.mxu0 %v174_v23  ;;  %vm3620_vm5 = vcmp.eq.s32.totalorder %v2873_v4, 64  ;;  %vm112_vm2 = vcmp.eq.s32.totalorder %v2873_v4, %v111_v35  ;;  %v117_v38 = vstv %s2936_s21  ;;  %s2802_s21 = smov 96   ;;  %v3105_v23 = vld [vmem:[%s3604_s2 + $0x8] sm:$0xff] }
  0x20   :  { %v161_v36 = vsel %vm3619_vm6, %v159_v33, %v2114_v31  ;;  %v2118_v37 = vsel %vm101_vm10, 1.0, %v2798_v14  ;;  %vm107_vm12 = vmor %vm106_vm13, %vm3620_vm5  ;;  %vm3621_vm15 = vcmask 1045504   ;;  %2398 = vmatprep.subr.mxu0 %v173_v30  ;;  %vm3622_vm14 = vcmp.eq.s32.totalorder %v2873_v4, 65  ;;  %v3118_v31 = vld [vmem:[%s3604_s2 + $0x10] sm:$0xff]  ;;  %v3124_v33 = vld [vmem:[%s3604_s2 + $0x18] sm:$0xff] }
  0x21   :  { %v163_v39 = vsel %vm3621_vm15, %v161_v36, %v2116_v34  ;;  %vm113_vm3 = vmor %vm112_vm2, %vm3622_vm14  ;;  %vm118_vm11 = vcmp.eq.s32.totalorder %v2873_v4, %v117_v38  ;;  %v123_v40 = vstv %s2943_s22  ;;  %vm3623_vm6 = vcmask 1046528   ;;  %2399 = vmatpush3.msra.mxu0 %v173_v30 }
  0x22   :  { %v165_v41 = vsel %vm3623_vm6, %v163_v39, %v2118_v37  ;;  %v2120_v42 = vsel %vm107_vm12, 1.0, %v2798_v14  ;;  %vm119_vm5 = vmor %vm118_vm11, %vm65_vm7  ;;  %vm124_vm10 = vcmp.eq.s32.totalorder %v2873_v4, %v123_v40  ;;  %v129_v43 = vstv %s2954_s25  ;;  %v3130_v37 = vld [vmem:[%s3604_s2 + $0x20] sm:$0xff]  ;;  %v3137_v40 = vld [vmem:[%s3604_s2 + $0x28] sm:$0xff] }
  0x23   :  { %2400 = vmatprep.mubr.msk.f32.mxu0 %vm182_vm4, %v165_v41  ;;  %v2122_v44 = vsel %vm113_vm3, 1.0, %v2798_v14  ;;  %vm125_vm2 = vmor %vm124_vm10, %vm72_vm8  ;;  %vm130_vm13 = vcmp.eq.s32.totalorder %v2873_v4, %v129_v43  ;;  %v135_v45 = vstv %s2962_s26  ;;  %v2124_v46 = vsel %vm119_vm5, 1.0, %v2798_v14 }
  0x24   :  { %v166_v47 = vsel %vm152_vm0, %v2120_v42, %v2122_v44  ;;  %vm131_vm7 = vmor %vm130_vm13, %vm79_vm9  ;;  %vm136_vm11 = vcmp.eq.s32.totalorder %v2873_v4, %v135_v45  ;;  %v141_v48 = vstv %s2973_s29  ;;  %v2126_v49 = vsel %vm125_vm2, 1.0, %v2798_v14 }
  0x25   :  { %v167_v50 = vsel %vm154_vm1, %v166_v47, %v2124_v46  ;;  %vm3624_vm12 = vcmp.eq.s32.totalorder %v2873_v4, 69  ;;  %vm142_vm15 = vcmp.eq.s32.totalorder %v2873_v4, %v141_v48  ;;  %v147_v51 = vstv %s2981_s1  ;;  %v3146_v46 = vld [vmem:[%s3604_s2 + $0x38] sm:$0xff] }
  0x26   :  { %vm137_vm8 = vmor %vm136_vm11, %vm3624_vm12  ;;  %v2128_v52 = vsel %vm131_vm7, 1.0, %v2798_v14  ;;  %vm3625_vm14 = vcmask 1042432   ;;  %vm3626_vm0 = vcmp.eq.s32.totalorder %v2873_v4, 70  ;;  %vm148_vm3 = vcmp.eq.s32.totalorder %v2873_v4, %v147_v51 }
  0x27   :  { %v168_v53 = vsel %vm3625_vm14, %v167_v50, %v2126_v49  ;;  %vm143_vm9 = vmor %vm142_vm15, %vm3626_vm0  ;;  %v2130_v54 = vsel %vm137_vm8, 1.0, %v2798_v14  ;;  %vm3627_vm6 = vcmask 1043456   ;;  %vm3628_vm1 = vcmp.eq.s32.totalorder %v2873_v4, 71  ;;  %v276_v4 = vld [vmem:[%s3606_s4] sm:$0xff] }
  0x28   :  { %v169_v55 = vsel %vm3627_vm6, %v168_v53, %v2128_v52  ;;  %vm149_vm5 = vmor %vm148_vm3, %vm3628_vm1  ;;  %v2132_v56 = vsel %vm143_vm9, 1.0, %v2798_v14  ;;  %vm3629_vm10 = vcmask 1044480   ;;  %vm3630_vm2 = vcmask 1045504   ;;  %v3160_v52 = vld [vmem:[%s3604_s2 + $0x30] sm:$0xff] }
  0x29   :  { %v170_v57 = vsel %vm3629_vm10, %v169_v55, %v2130_v54  ;;  %v2134_v58 = vsel %vm149_vm5, 1.0, %v2798_v14  ;;  %vm3631_vm13 = vcmask 1046528   ;;  %vm301_vm7 = vcmask 261120  }
  0x2a   :  { %v171_v59 = vsel %vm3630_vm2, %v170_v57, %v2132_v56  ;;  %vm646_vm11 = vcmask 523264  }
  0x2b   :  { %v172_v60 = vsel %vm3631_vm13, %v171_v59, %v2134_v58 }
  0x2c   :  { %2401 = vmatmul.mubr.msk.f32.vlgmr.msra.gmra.mxu0 %vm182_vm4, %v172_v60  ;;  %vm508_vm4 = vcmask 64512  }
  0xec   :  { %v3039_v63 = vpop.f32.mrf.mxu0 }
  0xee   :  { %v3041_v0 = vpop.f32.mrf.mxu0 }
  0xef   :  { %2411 = vmatprep.mubr.msk.f32.mxu1 %vm301_vm7, %v3041_v0 }
  0xf0   :  { %2412 = vmatmul.mubr.msk.f32.vlgmr.msra.gmra.mxu1 %vm301_vm7, %v3039_v63 }
  0xf1   :  { %2415 = vmatpush3.msra.mxu1 %v279_v62  ;;  %2422 = vmatprep.mubr.msk.f32.mxu1 %vm301_vm7, %v3041_v0 }
  0xf2   :  { %2416 = vmatprep.subr.mxu1 %v278_v1 }
  0xf3   :  { %2417 = vmatpush3.msra.mxu1 %v278_v1 }
  0xf4   :  { %2418 = vmatprep.subr.mxu1 %v277_v3 }
  0xf5   :  { %2419 = vmatpush3.msra.mxu1 %v277_v3 }
  0xf6   :  { %2420 = vmatprep.subr.mxu1 %v276_v4 }
  0xf7   :  { %2421 = vmatpush3.msra.mxu1 %v276_v4 }
  0xf8   :  { %2423 = vmatmul.mubr.msk.f32.vlgmr.msra.gmra.mxu1 %vm301_vm7, %v3039_v63 }
 0x1b0   :  { %v2413_v5 = vpop.f32.mrf.mxu1 }
 0x1b1   :  { %466 = vrot.lane.b32.xlu1 %v2413_v5, %s2799_s18  ;;  %470 = vrot.lane.b32.xlu0 %v2413_v5, %s2800_s19 }
 0x1b2   :  { %v374_v6 = vpop.f32.mrf.mxu1 }
 0x1b3   :  { %2441 = vmatprep.mubr.msk.f32.mxu1 %vm508_vm4, %v374_v6 }
 0x1b5   :  { %464 = vrot.lane.b32.xlu1 %v374_v6, %s2799_s18  ;;  %468 = vrot.lane.b32.xlu0 %v374_v6, %s2800_s19 }
 0x1b8   :  { %v3098_v21 = vpop.f32.mrf.mxu1 }
 0x1b9   :  { %460 = vrot.lane.b32.xlu1 %v374_v6, %s2801_s20  ;;  %462 = vrot.lane.b32.xlu0 %v2413_v5, %s2801_s20 }
 0x1ba   :  { %v3100_v22 = vpop.f32.mrf.mxu1 }
 0x223   :  { %v467_v7 = vpop.permute.xlu1 %466  ;;  %v471_v8 = vpop.permute.xlu0 %470 }
 0x224   :  { %506 = vrot.lane.b32.xlu0 %v471_v8, %s2802_s21 }
 0x227   :  { %v469_v9 = vpop.permute.xlu0 %468  ;;  %v465_v10 = vpop.permute.xlu1 %464 }
 0x228   :  { %502 = vrot.lane.b32.xlu0 %v467_v7, %s2802_s21  ;;  %504 = vrot.lane.b32.xlu1 %v469_v9, %s2802_s21 }
 0x22b   :  { %v463_v11 = vpop.permute.xlu0 %462  ;;  %v461_v12 = vpop.permute.xlu1 %460 }
 0x22c   :  { %500 = vrot.lane.b32.xlu1 %v465_v10, %s2802_s21  ;;  %498 = vrot.lane.b32.xlu0 %v463_v11, %s2802_s21 }
 0x230   :  { %496 = vrot.lane.b32.xlu1 %v461_v12, %s2802_s21  ;;  %494 = vrot.lane.b32.xlu0 %v2413_v5, %s2802_s21 }
 0x234   :  { %492 = vrot.lane.b32.xlu1 %v374_v6, %s2802_s21 }
 0x296   :  { %v507_v13 = vpop.permute.xlu0 %506 }
 0x297   :  { %2425 = vmatprep.subr.msk.mxu1 %vm508_vm4, %v507_v13 }
 0x298   :  { %2426 = vmatpush3.xpose.msk.msra.mxu1 %vm508_vm4, %v507_v13 }
 0x29a   :  { %v505_v14 = vpop.permute.xlu1 %504  ;;  %v503_v15 = vpop.permute.xlu0 %502 }
 0x29b   :  { %2427 = vmatprep.subr.msk.mxu1 %vm508_vm4, %v505_v14 }
 0x29c   :  { %2428 = vmatpush3.xpose.msk.msra.mxu1 %vm508_vm4, %v505_v14 }
 0x29d   :  { %2429 = vmatprep.subr.msk.mxu1 %vm508_vm4, %v503_v15 }
 0x29e   :  { %v501_v16 = vpop.permute.xlu1 %500  ;;  %v499_v17 = vpop.permute.xlu0 %498 }
 0x2a0   :  { %2430 = vmatpush3.xpose.msk.msra.mxu1 %vm508_vm4, %v503_v15 }
 0x2a1   :  { %2431 = vmatprep.subr.msk.mxu1 %vm508_vm4, %v501_v16 }
 0x2a2   :  { %v497_v18 = vpop.permute.xlu1 %496  ;;  %v495_v19 = vpop.permute.xlu0 %494 }
 0x2a4   :  { %2432 = vmatpush3.xpose.msk.msra.mxu1 %vm508_vm4, %v501_v16 }
 0x2a5   :  { %2433 = vmatprep.subr.msk.mxu1 %vm508_vm4, %v499_v17 }
 0x2a6   :  { %v493_v20 = vpop.permute.xlu1 %492 }
 0x2a8   :  { %2434 = vmatpush3.xpose.msk.msra.mxu1 %vm508_vm4, %v499_v17 }
 0x2a9   :  { %2435 = vmatprep.subr.msk.mxu1 %vm508_vm4, %v497_v18 }
 0x2ac   :  { %2436 = vmatpush3.xpose.msk.msra.mxu1 %vm508_vm4, %v497_v18 }
 0x2ad   :  { %2437 = vmatprep.subr.msk.mxu1 %vm508_vm4, %v495_v19 }
 0x2b0   :  { %2438 = vmatpush3.xpose.msk.msra.mxu1 %vm508_vm4, %v495_v19 }
 0x2b1   :  { %2439 = vmatprep.subr.msk.mxu1 %vm508_vm4, %v493_v20 }
 0x2b4   :  { %2440 = vmatpush3.xpose.msk.msra.mxu1 %vm508_vm4, %v493_v20 }
 0x2b7   :  { %2442 = vmatmul.mubr.msk.f32.vlgmr.msra.gmra.mxu1 %vm508_vm4, %v2413_v5 }
 0x2b8   :  { %2444 = vmatprep.mubr.msk.f32.mxu1 %vm508_vm4, %v461_v12 }
 0x2bb   :  { %2445 = vmatmul.mubr.msk.f32.gmra.mxu1 %vm508_vm4, %v463_v11 }
 0x2bc   :  { %2447 = vmatprep.mubr.msk.f32.mxu1 %vm508_vm4, %v465_v10 }
 0x2bf   :  { %2448 = vmatmul.mubr.msk.f32.gmra.mxu1 %vm508_vm4, %v467_v7 }
 0x2c0   :  { %2450 = vmatprep.mubr.msk.f32.mxu1 %vm508_vm4, %v469_v9 }
 0x2c3   :  { %2451 = vmatmul.mubr.msk.f32.gmra.mxu1 %vm508_vm4, %v471_v8 }
 0x377   :  { %v2443_v24 = vpop.f32.mrf.mxu1 }
 0x378   :  { %v613_v26 = vadd.f32 %v2443_v24, %v3105_v23 }
 0x379   :  { %v607_v27 = vpop.f32.mrf.mxu1 }
 0x37a   :  { %v608_v28 = vadd.f32 %v607_v27, %v3110_v25  ;;  %v650_v29 = vsel %vm646_vm11, %v613_v26, -inf }
 0x37b   :  { %651 = vmax.xlane.f32.xlu1 %v650_v29  ;;  %v2446_v30 = vpop.f32.mrf.mxu1 }
 0x37c   :  { %v647_v32 = vsel %vm646_vm11, %v608_v28, -inf  ;;  %v623_v38 = vadd.f32 %v2446_v30, %v3124_v33 }
 0x37d   :  { %v617_v34 = vpop.f32.mrf.mxu1  ;;  %648 = vmax.xlane.f32.xlu0 %v647_v32 }
 0x37e   :  { %v618_v35 = vadd.f32 %v617_v34, %v3118_v31  ;;  %v656_v45 = vsel %vm646_vm11, %v623_v38, -inf }
 0x37f   :  { %v2449_v36 = vpop.f32.mrf.mxu1 }
 0x380   :  { %v653_v39 = vsel %vm646_vm11, %v618_v35, -inf  ;;  %v633_v43 = vadd.f32 %v2449_v36, %v3137_v40 }
 0x381   :  { %v627_v41 = vpop.f32.mrf.mxu1  ;;  %654 = vmax.xlane.f32.xlu0 %v653_v39 }
 0x382   :  { %v628_v42 = vadd.f32 %v627_v41, %v3130_v37  ;;  %v662_v49 = vsel %vm646_vm11, %v633_v43, -inf }
 0x383   :  { %v2452_v47 = vpop.f32.mrf.mxu1 }
 0x384   :  { %v659_v44 = vsel %vm646_vm11, %v628_v42, -inf  ;;  %v643_v48 = vadd.f32 %v2452_v47, %v3146_v46 }
 0x385   :  { %660 = vmax.xlane.f32.xlu1 %v659_v44  ;;  %657 = vmax.xlane.f32.xlu0 %v656_v45  ;;  %v637_v51 = vpop.f32.mrf.mxu1 }
 0x386   :  { %v668_v50 = vsel %vm646_vm11, %v643_v48, -inf  ;;  %v3163_v53 = vadd.f32 %v637_v51, %v3160_v52 }
 0x388   :  { %v665_v54 = vsel %vm646_vm11, %v3163_v53, -inf }
 0x389   :  { %663 = vmax.xlane.f32.xlu0 %v662_v49 }
 0x38d   :  { %669 = vmax.xlane.f32.xlu0 %v668_v50 }
 0x396   :  { %486 = vrot.lane.b32.xlu1 %v3100_v22, %s2803_s14 }
 0x3a3   :  { %488 = vrot.lane.b32.xlu0 %v3098_v21, %s2803_s14 }
 0x3a7   :  { %482 = vrot.lane.b32.xlu0 %v3098_v21, %s2804_s15 }
 0x3ba   :  { %666 = vmax.xlane.f32.xlu1 %v665_v54 }
 0x3cb   :  { %480 = vrot.lane.b32.xlu1 %v3100_v22, %s2804_s15 }
 0x404   :  { %v652_v55 = vpop.xlane.xlu1 %651 }
 0x405   :  { %v672_v56 = vsub.f32 %v613_v26, %v652_v55 }
 0x406   :  { %v649_v57 = vpop.xlane.xlu0 %648 }
 0x407   :  { %v681_v58 = vmul.f32 1.442695, %v672_v56  ;;  %v671_v59 = vsub.f32 %v608_v28, %v649_v57 }
 0x409   :  { %2673 = vpow2.f32 %v681_v58  ;;  %v679_v60 = vmul.f32 1.442695, %v671_v59 }
 0x40a   :  { %v655_v61 = vpop.xlane.xlu0 %654 }
 0x40b   :  { %2675 = vpow2.f32 %v679_v60  ;;  %v673_v62 = vsub.f32 %v618_v35, %v655_v61 }
 0x40d   :  { %v683_v1 = vmul.f32 1.442695, %v673_v62 }
 0x40e   :  { %v661_v3 = vpop.xlane.xlu1 %660  ;;  %v658_v4 = vpop.xlane.xlu0 %657 }
 0x40f   :  { %2677 = vpow2.f32 %v683_v1  ;;  %v675_v5 = vsub.f32 %v628_v42, %v661_v3  ;;  %v674_v6 = vsub.f32 %v623_v38, %v658_v4 }
 0x411   :  { %v687_v7 = vmul.f32 1.442695, %v675_v5  ;;  %v685_v8 = vmul.f32 1.442695, %v674_v6 }
 0x412   :  { %v664_v9 = vpop.xlane.xlu0 %663  ;;  %v487_v24 = vpop.permute.xlu1 %486 }
 0x413   :  { %2679 = vpow2.f32 %v687_v7  ;;  %v676_v10 = vsub.f32 %v633_v43, %v664_v9 }
 0x414   :  { %2681 = vpow2.f32 %v685_v8 }
 0x415   :  { %v689_v11 = vmul.f32 1.442695, %v676_v10 }
 0x416   :  { %v3169_v12 = vpop.eup %2673  ;;  %v670_v13 = vpop.xlane.xlu0 %669 }
 0x417   :  { %2683 = vpow2.f32 %v689_v11  ;;  %v678_v14 = vsub.f32 %v643_v48, %v670_v13  ;;  %v698_v15 = vsel %vm646_vm11, %v3169_v12, 0.0  ;;  %v3211_v13 = vshrl.u32 %v46_v2, 7 }
 0x418   :  { %v2676_v16 = vpop.eup %2675  ;;  %699 = vadd.xlane.f32.xlu0 %v698_v15 }
 0x419   :  { %v693_v17 = vmul.f32 1.442695, %v678_v14  ;;  %v695_v18 = vsel %vm646_vm11, %v2676_v16, 0.0 }
 0x41a   :  { %696 = vadd.xlane.f32.xlu1 %v695_v18  ;;  %v489_v19 = vpop.permute.xlu0 %488  ;;  %v3217_v18 = vld [vmem:[%s3609_s7] sm:$0xff] }
 0x41b   :  { %2685 = vpow2.f32 %v693_v17  ;;  %2453 = vmatprep.subr.mxu0 %v489_v19 }
 0x41c   :  { %v3174_v20 = vpop.eup %2677  ;;  %2454 = vmatpush3.msra.mxu0 %v489_v19 }
 0x41d   :  { %2455 = vmatprep.subr.mxu0 %v487_v24  ;;  %v701_v26 = vsel %vm646_vm11, %v3174_v20, 0.0 }
 0x41e   :  { %702 = vadd.xlane.f32.xlu1 %v701_v26  ;;  %2456 = vmatpush3.msra.mxu0 %v487_v24  ;;  %v483_v27 = vpop.permute.xlu0 %482 }
 0x41f   :  { %2457 = vmatprep.subr.mxu0 %v483_v27 }
 0x420   :  { %v3178_v28 = vpop.eup %2679  ;;  %2458 = vmatpush3.msra.mxu0 %v483_v27 }
 0x421   :  { %v2682_v29 = vpop.eup %2681  ;;  %v707_v30 = vsel %vm646_vm11, %v3178_v28, 0.0 }
 0x422   :  { %708 = vadd.xlane.f32.xlu1 %v707_v30  ;;  %v704_v32 = vsel %vm646_vm11, %v2682_v29, 0.0 }
 0x423   :  { %705 = vadd.xlane.f32.xlu0 %v704_v32 }
 0x424   :  { %v2684_v34 = vpop.eup %2683 }
 0x425   :  { %v710_v35 = vsel %vm646_vm11, %v2684_v34, 0.0 }
 0x427   :  { %711 = vadd.xlane.f32.xlu0 %v710_v35 }
 0x428   :  { %v3184_v36 = vpop.eup %2685 }
 0x429   :  { %v716_v38 = vsel %vm646_vm11, %v3184_v36, 0.0 }
 0x42a   :  { %717 = vadd.xlane.f32.xlu1 %v716_v38 }
 0x43d   :  { %476 = vrot.lane.b32.xlu0 %v3098_v21, %s2802_s21 }
 0x443   :  { %v667_v39 = vpop.xlane.xlu1 %666 }
 0x444   :  { %v677_v41 = vsub.f32 %v3163_v53, %v667_v39 }
 0x446   :  { %v691_v42 = vmul.f32 1.442695, %v677_v41 }
 0x447   :  { %v481_v43 = vpop.permute.xlu1 %480 }
 0x448   :  { %2687 = vpow2.f32 %v691_v42  ;;  %2459 = vmatprep.subr.mxu0 %v481_v43 }
 0x449   :  { %2460 = vmatpush3.msra.mxu0 %v481_v43 }
 0x455   :  { %v2688_v44 = vpop.eup %2687 }
 0x456   :  { %v713_v45 = vsel %vm646_vm11, %v2688_v44, 0.0 }
 0x457   :  { %714 = vadd.xlane.f32.xlu1 %v713_v45 }
 0x468   :  { %474 = vrot.lane.b32.xlu1 %v3100_v22, %s2802_s21 }
 0x4a1   :  { %v700_v48 = vpop.xlane.xlu0 %699 }
 0x4a3   :  { %v697_v47 = vpop.xlane.xlu1 %696 }
 0x4a4   :  { %2689 = vrcp.f32 %v697_v47 }
 0x4a5   :  { %2691 = vrcp.f32 %v700_v48 }
 0x4a7   :  { %v703_v55 = vpop.xlane.xlu1 %702 }
 0x4a8   :  { %2693 = vrcp.f32 %v703_v55  ;;  %v280_v55 = vld [vmem:[%s3607_s5] sm:$0xff] }
 0x4ab   :  { %v709_v56 = vpop.xlane.xlu1 %708 }
 0x4ac   :  { %v706_v49 = vpop.xlane.xlu0 %705 }
 0x4ad   :  { %2695 = vrcp.f32 %v706_v49 }
 0x4ae   :  { %2697 = vrcp.f32 %v709_v56  ;;  %v299_v56 = vld [vmem:[%s3608_s6 + $0x78] sm:$0xff] }
 0x4af   :  { %2492 = vmatprep.subr.mxu1 %v299_v56 }
 0x4b0   :  { %v712_v50 = vpop.xlane.xlu0 %711  ;;  %2493 = vmatpush3.msra.mxu1 %v299_v56 }
 0x4b1   :  { %v2690_v51 = vpop.eup %2689  ;;  %2699 = vrcp.f32 %v712_v50 }
 0x4b2   :  { %v727_v54 = vmul.f32 %v2690_v51, %v2676_v16  ;;  %v2692_v60 = vpop.eup %2691  ;;  %v872_v16 = vsub.s32 0, %v3211_v13  ;;  %v283_v51 = vld [vmem:[%s3607_s5 + $0x18] sm:$0xff] }
 0x4b3   :  { %v718_v57 = vpop.xlane.xlu1 %717  ;;  %v728_v62 = vmul.f32 %v2692_v60, %v3169_v12  ;;  %v295_v60 = vld [vmem:[%s3608_s6 + $0x58] sm:$0xff] }
 0x4b4   :  { %v477_v53 = vpop.permute.xlu0 %476  ;;  %2469 = vmatprep.mubr.msk.f32.mxu0 %vm646_vm11, %v727_v54  ;;  %v873_v27 = vrot.slane %v3217_v18, %v872_v16  ;;  %v282_v54 = vld [vmem:[%s3607_s5 + $0x10] sm:$0xff] }
 0x4b5   :  { %2461 = vmatprep.subr.mxu0 %v477_v53  ;;  %v2694_v61 = vpop.eup %2693 }
 0x4b6   :  { %2462 = vmatpush3.msra.mxu0 %v477_v53  ;;  %v729_v3 = vmul.f32 %v2694_v61, %v3174_v20  ;;  %v281_v53 = vld [vmem:[%s3607_s5 + $0x8] sm:$0xff]  ;;  %v294_v61 = vld [vmem:[%s3608_s6 + $0x50] sm:$0xff] }
 0x4ba   :  { %v2696_v1 = vpop.eup %2695 }
 0x4bb   :  { %v2698_v4 = vpop.eup %2697  ;;  %v730_v5 = vmul.f32 %v2696_v1, %v2682_v29  ;;  %v292_v1 = vld [vmem:[%s3608_s6 + $0x40] sm:$0xff] }
 0x4bc   :  { %v731_v7 = vmul.f32 %v2698_v4, %v3178_v28  ;;  %v290_v4 = vld [vmem:[%s3608_s6 + $0x30] sm:$0xff] }
 0x4be   :  { %v2700_v6 = vpop.eup %2699 }
 0x4e0   :  { %v715_v58 = vpop.xlane.xlu1 %714 }
 0x4e1   :  { %2701 = vrcp.f32 %v715_v58  ;;  %v297_v58 = vld [vmem:[%s3608_s6 + $0x68] sm:$0xff] }
 0x4e2   :  { %2703 = vrcp.f32 %v718_v57  ;;  %v298_v57 = vld [vmem:[%s3608_s6 + $0x70] sm:$0xff] }
 0x4e3   :  { %2494 = vmatprep.subr.mxu1 %v298_v57 }
 0x4e4   :  { %v475_v59 = vpop.permute.xlu1 %474  ;;  %2495 = vmatpush3.msra.mxu1 %v298_v57 }
 0x4e5   :  { %2463 = vmatprep.subr.mxu0 %v475_v59  ;;  %2496 = vmatprep.subr.mxu1 %v297_v58 }
 0x4e6   :  { %2464 = vmatpush3.msra.mxu0 %v475_v59  ;;  %v296_v59 = vld [vmem:[%s3608_s6 + $0x60] sm:$0xff]  ;;  %2497 = vmatpush3.msra.mxu1 %v297_v58 }
 0x4e7   :  { %2465 = vmatprep.subr.mxu0 %v3098_v21  ;;  %2498 = vmatprep.subr.mxu1 %v296_v59 }
 0x4e8   :  { %2466 = vmatpush3.msra.mxu0 %v3098_v21  ;;  %v732_v21 = vmul.f32 %v2700_v6, %v2684_v34  ;;  %2499 = vmatpush3.msra.mxu1 %v296_v59  ;;  %v288_v6 = vld [vmem:[%s3608_s6 + $0x20] sm:$0xff] }
 0x4e9   :  { %2467 = vmatprep.subr.mxu0 %v3100_v22  ;;  %2500 = vmatprep.subr.mxu1 %v295_v60 }
 0x4ea   :  { %2468 = vmatpush3.msra.mxu0 %v3100_v22  ;;  %2501 = vmatpush3.msra.mxu1 %v295_v60 }
 0x4eb   :  { %2470 = vmatmul.mubr.msk.f32.vlgmr.msra.gmra.mxu0 %vm646_vm11, %v728_v62  ;;  %2481 = vmatprep.subr.mxu0 %v283_v51  ;;  %v293_v62 = vld [vmem:[%s3608_s6 + $0x48] sm:$0xff] }
 0x4ec   :  { %2472 = vmatprep.mubr.msk.f32.mxu0 %vm646_vm11, %v729_v3  ;;  %2482 = vmatpush3.msra.mxu0 %v283_v51  ;;  %v291_v3 = vld [vmem:[%s3608_s6 + $0x38] sm:$0xff] }
 0x4ed   :  { %2483 = vmatprep.subr.mxu0 %v282_v54  ;;  %2502 = vmatprep.subr.mxu1 %v294_v61 }
 0x4ee   :  { %v2702_v8 = vpop.eup %2701  ;;  %2484 = vmatpush3.msra.mxu0 %v282_v54  ;;  %2503 = vmatpush3.msra.mxu1 %v294_v61 }
 0x4ef   :  { %2473 = vmatmul.mubr.msk.f32.gmra.mxu0 %vm646_vm11, %v730_v5  ;;  %v2704_v9 = vpop.eup %2703  ;;  %v733_v10 = vmul.f32 %v2702_v8, %v2688_v44  ;;  %2485 = vmatprep.subr.mxu0 %v281_v53  ;;  %v289_v5 = vld [vmem:[%s3608_s6 + $0x28] sm:$0xff] }
 0x4f0   :  { %2475 = vmatprep.mubr.msk.f32.mxu0 %vm646_vm11, %v731_v7  ;;  %v734_v22 = vmul.f32 %v2704_v9, %v3184_v36  ;;  %2486 = vmatpush3.msra.mxu0 %v281_v53 }
 0x4f1   :  { %2487 = vmatprep.subr.mxu0 %v280_v55  ;;  %2504 = vmatprep.subr.mxu1 %v293_v62 }
 0x4f2   :  { %2488 = vmatpush3.msra.mxu0 %v280_v55  ;;  %2505 = vmatpush3.msra.mxu1 %v293_v62 }
 0x4f3   :  { %2476 = vmatmul.mubr.msk.f32.gmra.mxu0 %vm646_vm11, %v732_v21  ;;  %2506 = vmatprep.subr.mxu1 %v292_v1 }
 0x4f4   :  { %2478 = vmatprep.mubr.msk.f32.mxu0 %vm646_vm11, %v733_v10  ;;  %2507 = vmatpush3.msra.mxu1 %v292_v1 }
 0x4f5   :  { %2508 = vmatprep.subr.mxu1 %v291_v3 }
 0x4f6   :  { %2509 = vmatpush3.msra.mxu1 %v291_v3 }
 0x4f7   :  { %2479 = vmatmul.mubr.msk.f32.gmra.mxu0 %vm646_vm11, %v734_v22  ;;  %2510 = vmatprep.subr.mxu1 %v290_v4 }
 0x4f8   :  { %2511 = vmatpush3.msra.mxu1 %v290_v4  ;;  %v2170_v4 = vld [vmem:[%s3605_s3 + $0x38] sm:$0xff] }
 0x4f9   :  { %2512 = vmatprep.subr.mxu1 %v289_v5 }
 0x4fa   :  { %2513 = vmatpush3.msra.mxu1 %v289_v5  ;;  %v2174_v5 = vld [vmem:[%s3606_s4 + $0x38] sm:$0xff] }
 0x4fb   :  { %2514 = vmatprep.subr.mxu1 %v288_v6  ;;  %2538 = vmatprep.subr.mxu0 %v2174_v5 }
 0x4fc   :  { %2515 = vmatpush3.msra.mxu1 %v288_v6  ;;  %v2169_v6 = vld [vmem:[%s3605_s3 + $0x30] sm:$0xff] }
 0x5ab   :  { %v2471_v11 = vpop.f32.mrf.mxu0 }
 0x5ad   :  { %v825_v12 = vpop.f32.mrf.mxu0 }
 0x5af   :  { %v2474_v14 = vpop.f32.mrf.mxu0 }
 0x5b0   :  { %v865_v19 = vadd.f32 %v2474_v14, %v2471_v11  ;;  %v907_v11 = vsub.s32 1, %v3211_v13 }
 0x5b1   :  { %v835_v15 = vpop.f32.mrf.mxu0 }
 0x5b2   :  { %v864_v24 = vadd.f32 %v835_v15, %v825_v12  ;;  %v913_v12 = vsub.s32 2, %v3211_v13  ;;  %v908_v14 = vrot.slane %v3217_v18, %v907_v11 }
 0x5b3   :  { %v2477_v17 = vpop.f32.mrf.mxu0 }
 0x5b4   :  { %v867_v26 = vadd.f32 %v2477_v17, %v865_v19  ;;  %v914_v19 = vrot.slane %v3217_v18, %v913_v12 }
 0x5b5   :  { %v845_v20 = vpop.f32.mrf.mxu0 }
 0x5b6   :  { %v866_v28 = vadd.f32 %v864_v24, %v845_v20 }
 0x5b7   :  { %v2480_v2 = vpop.f32.mrf.mxu0 }
 0x5b8   :  { %v869_v29 = vadd.f32 %v2480_v2, %v867_v26 }
 0x5b9   :  { %v855_v30 = vpop.f32.mrf.mxu0 }
 0x5ba   :  { %v875_v32 = vadd.f32 %v873_v27, %v869_v29  ;;  %v868_v34 = vadd.f32 %v866_v28, %v855_v30  ;;  %v287_v29 = vld [vmem:[%s3608_s6 + $0x18] sm:$0xff]  ;;  %v286_v30 = vld [vmem:[%s3608_s6 + $0x10] sm:$0xff] }
 0x5bb   :  { %2516 = vmatprep.subr.mxu1 %v287_v29 }
 0x5bc   :  { %v874_v35 = vadd.f32 %v873_v27, %v868_v34  ;;  %v877_v36 = vadd.f32 %v3039_v63, %v875_v32  ;;  %2517 = vmatpush3.msra.mxu1 %v287_v29  ;;  %v285_v32 = vld [vmem:[%s3608_s6 + $0x8] sm:$0xff]  ;;  %v284_v34 = vld [vmem:[%s3608_s6] sm:$0xff] }
 0x5bd   :  { %2518 = vmatprep.subr.mxu1 %v286_v30 }
 0x5be   :  { %v881_v38 = vsel %vm301_vm7, %v877_v36, 0.0  ;;  %v876_v39 = vadd.f32 %v874_v35, %v3041_v0  ;;  %2519 = vmatpush3.msra.mxu1 %v286_v30  ;;  %v919_v35 = vsub.s32 3, %v3211_v13 }
 0x5bf   :  { %882 = vadd.xlane.f32.xlu1 %v881_v38  ;;  %2520 = vmatprep.subr.mxu1 %v285_v32 }
 0x5c0   :  { %v878_v41 = vsel %vm301_vm7, %v876_v39, 0.0  ;;  %2521 = vmatpush3.msra.mxu1 %v285_v32 }
 0x5c1   :  { %879 = vadd.xlane.f32.xlu0 %v878_v41  ;;  %2522 = vmatprep.subr.mxu1 %v284_v34 }
 0x5c2   :  { %2523 = vmatpush3.msra.mxu1 %v284_v34 }
 0x5c3   :  { %2527 = vmatprep.subr.mxu1 %v2170_v4 }
 0x648   :  { %v883_v42 = vpop.xlane.xlu1 %882 }
 0x649   :  { %v886_v43 = vmul.f32 0.03125, %v883_v42 }
 0x64a   :  { %v880_v44 = vpop.xlane.xlu0 %879 }
 0x64b   :  { %v885_v45 = vmul.f32 0.03125, %v880_v44  ;;  %v3226_v47 = vsub.f32 %v877_v36, %v886_v43  ;;  %v920_v36 = vrot.slane %v3217_v18, %v919_v35 }
 0x64d   :  { %v3228_v48 = vsub.f32 %v876_v39, %v885_v45  ;;  %v890_v0 = vmul.f32 %v3226_v47, %v3226_v47  ;;  %v1006_v45 = vsub.s32 4, %v3211_v13 }
 0x64f   :  { %v889_v49 = vmul.f32 %v3228_v48, %v3228_v48  ;;  %v894_v50 = vsel %vm301_vm7, %v890_v0, 0.0 }
 0x651   :  { %v891_v63 = vsel %vm301_vm7, %v889_v49, 0.0 }
 0x652   :  { %892 = vadd.xlane.f32.xlu0 %v891_v63 }
 0x656   :  { %895 = vadd.xlane.f32.xlu0 %v894_v50 }
 0x6db   :  { %v893_v7 = vpop.xlane.xlu0 %892 }
 0x6dc   :  { %v897_v8 = vmul.f32 0.03125, %v893_v7  ;;  %v2173_v7 = vld [vmem:[%s3606_s4 + $0x30] sm:$0xff] }
 0x6de   :  { %v899_v21 = vadd.f32 1e-05, %v897_v8  ;;  %v2168_v8 = vld [vmem:[%s3605_s3 + $0x28] sm:$0xff] }
 0x6df   :  { %v896_v9 = vpop.xlane.xlu0 %895 }
 0x6e0   :  { %2705 = vrsqrt.f32 %v899_v21  ;;  %v898_v10 = vmul.f32 0.03125, %v896_v9  ;;  %v2172_v21 = vld [vmem:[%s3606_s4 + $0x28] sm:$0xff]  ;;  %v2167_v9 = vld [vmem:[%s3605_s3 + $0x20] sm:$0xff] }
 0x6e2   :  { %v900_v22 = vadd.f32 1e-05, %v898_v10  ;;  %v2171_v10 = vld [vmem:[%s3606_s4 + $0x20] sm:$0xff] }
 0x6e4   :  { %2707 = vrsqrt.f32 %v900_v22 }
 0x6ed   :  { %v2706_v15 = vpop.eup %2705 }
 0x6ee   :  { %v903_v17 = vmul.f32 %v2706_v15, %v3228_v48 }
 0x6f0   :  { %v909_v20 = vmul.f32 %v908_v14, %v903_v17 }
 0x6f1   :  { %v2708_v24 = vpop.eup %2707 }
 0x6f2   :  { %v904_v26 = vmul.f32 %v2708_v24, %v3226_v47  ;;  %v915_v27 = vadd.f32 %v914_v19, %v909_v20  ;;  %v1007_v47 = vrot.slane %v3217_v18, %v1006_v45  ;;  %v1113_v24 = vsub.s32 5, %v3211_v13 }
 0x6f4   :  { %v910_v2 = vmul.f32 %v908_v14, %v904_v26  ;;  %2489 = vmatprep.mubr.msk.f32.mxu0 %vm301_vm7, %v915_v27 }
 0x6f6   :  { %v916_v28 = vadd.f32 %v914_v19, %v910_v2  ;;  %v1119_v2 = vsub.s32 6, %v3211_v13 }
 0x6f8   :  { %2490 = vmatmul.mubr.msk.f32.vlgmr.msra.gmra.mxu0 %vm301_vm7, %v916_v28  ;;  %v1120_v34 = vrot.slane %v3217_v18, %v1119_v2 }
 0x6f9   :  { %2539 = vmatpush3.msra.mxu0 %v2174_v5 }
 0x6fa   :  { %2540 = vmatprep.subr.mxu0 %v2173_v7 }
 0x6fb   :  { %2541 = vmatpush3.msra.mxu0 %v2173_v7 }
 0x6fc   :  { %2542 = vmatprep.subr.mxu0 %v2172_v21 }
 0x6fd   :  { %2543 = vmatpush3.msra.mxu0 %v2172_v21 }
 0x6fe   :  { %2544 = vmatprep.subr.mxu0 %v2171_v10 }
 0x6ff   :  { %2545 = vmatpush3.msra.mxu0 %v2171_v10 }
 0x7b8   :  { %v2491_v38 = vpop.f32.mrf.mxu0 }
 0x7b9   :  { %v999_v39 = vadd.f32 %v2491_v38, %v920_v36 }
 0x7ba   :  { %v993_v41 = vpop.f32.mrf.mxu0 }
 0x7bb   :  { %v994_v42 = vadd.f32 %v993_v41, %v920_v36  ;;  %v1003_v44 = vmax.f32 %v999_v39, 0.0 }
 0x7bd   :  { %v1002_v43 = vmax.f32 %v994_v42, 0.0 }
 0x7bf   :  { %2524 = vmatprep.mubr.f32.mxu1 %v1002_v43 }
 0x7c0   :  { %2525 = vmatmul.mubr.f32.vlgmr.msra.gmra.mxu1 %v1003_v44 }
 0x7c1   :  { %2528 = vmatpush3.msra.mxu1 %v2170_v4 }
 0x7c2   :  { %2529 = vmatprep.subr.mxu1 %v2169_v6 }
 0x7c3   :  { %2530 = vmatpush3.msra.mxu1 %v2169_v6 }
 0x7c4   :  { %2531 = vmatprep.subr.mxu1 %v2168_v8 }
 0x7c5   :  { %2532 = vmatpush3.msra.mxu1 %v2168_v8 }
 0x7c6   :  { %2533 = vmatprep.subr.mxu1 %v2167_v9 }
 0x7c7   :  { %2534 = vmatpush3.msra.mxu1 %v2167_v9 }
 0x880   :  { %v2526_v48 = vpop.f32.mrf.mxu1 }
 0x881   :  { %v1080_v49 = vadd.f32 %v2526_v48, %v1007_v47 }
 0x882   :  { %v1074_v63 = vpop.f32.mrf.mxu1 }
 0x883   :  { %v1075_v0 = vadd.f32 %v1074_v63, %v1007_v47  ;;  %v1084_v50 = vadd.f32 %v1080_v49, %v916_v28 }
 0x885   :  { %v1088_v51 = vsel %vm301_vm7, %v1084_v50, 0.0  ;;  %v1083_v54 = vadd.f32 %v1075_v0, %v915_v27  ;;  %v1114_v27 = vrot.slane %v3217_v18, %v1113_v24 }
 0x886   :  { %1089 = vadd.xlane.f32.xlu0 %v1088_v51 }
 0x887   :  { %v1085_v53 = vsel %vm301_vm7, %v1083_v54, 0.0 }
 0x888   :  { %1086 = vadd.xlane.f32.xlu1 %v1085_v53 }
 0x90f   :  { %v1090_v55 = vpop.xlane.xlu0 %1089 }
 0x910   :  { %v1092_v56 = vmul.f32 0.03125, %v1090_v55 }
 0x911   :  { %v1087_v57 = vpop.xlane.xlu1 %1086 }
 0x912   :  { %v1094_v58 = vsub.f32 %v1084_v50, %v1092_v56  ;;  %v1091_v59 = vmul.f32 0.03125, %v1087_v57 }
 0x914   :  { %v1093_v60 = vsub.f32 %v1083_v54, %v1091_v59  ;;  %v1096_v61 = vmul.f32 %v1094_v58, %v1094_v58 }
 0x916   :  { %v1100_v62 = vsel %vm301_vm7, %v1096_v61, 0.0  ;;  %v1095_v1 = vmul.f32 %v1093_v60, %v1093_v60 }
 0x917   :  { %1101 = vadd.xlane.f32.xlu0 %v1100_v62 }
 0x918   :  { %v1097_v3 = vsel %vm301_vm7, %v1095_v1, 0.0 }
 0x919   :  { %1098 = vadd.xlane.f32.xlu1 %v1097_v3 }
 0x9a0   :  { %v1102_v22 = vpop.xlane.xlu0 %1101 }
 0x9a1   :  { %v1104_v14 = vmul.f32 0.03125, %v1102_v22 }
 0x9a2   :  { %v1099_v15 = vpop.xlane.xlu1 %1098 }
 0x9a3   :  { %v1106_v17 = vadd.f32 1e-05, %v1104_v14  ;;  %v1103_v19 = vmul.f32 0.03125, %v1099_v15 }
 0x9a5   :  { %2709 = vrsqrt.f32 %v1106_v17  ;;  %v1105_v20 = vadd.f32 1e-05, %v1103_v19 }
 0x9a7   :  { %2711 = vrsqrt.f32 %v1105_v20 }
 0x9b2   :  { %v2710_v26 = vpop.eup %2709 }
 0x9b3   :  { %v1110_v28 = vmul.f32 %v2710_v26, %v1094_v58 }
 0x9b4   :  { %v2712_v29 = vpop.eup %2711 }
 0x9b5   :  { %v1109_v30 = vmul.f32 %v2712_v29, %v1093_v60  ;;  %v1116_v32 = vmul.f32 %v1114_v27, %v1110_v28 }
 0x9b7   :  { %v1115_v36 = vmul.f32 %v1114_v27, %v1109_v30  ;;  %v3354_v39 = vadd.f32 %v1120_v34, %v1116_v32 }
 0x9b9   :  { %v3352_v38 = vadd.f32 %v1120_v34, %v1115_v36 }
 0x9bb   :  { %2535 = vmatprep.mubr.msk.f32.mxu1 %vm301_vm7, %v3352_v38  ;;  %2546 = vmatprep.mubr.msk.f32.mxu0 %vm301_vm7, %v3352_v38 }
 0x9bc   :  { %2536 = vmatmul.mubr.msk.f32.vlgmr.msra.gmra.mxu1 %vm301_vm7, %v3354_v39  ;;  %2547 = vmatmul.mubr.msk.f32.vlgmr.msra.gmra.mxu0 %vm301_vm7, %v3354_v39 }
 0xa7c   :  { %v2537_v41 = vpop.f32.mrf.mxu1  ;;  %v3402_v57 = vpop.f32.mrf.mxu0 }
 0xa7d   :  { %1325 = vrot.lane.b32.xlu1 %v2537_v41, %s2800_s19 }
 0xa7e   :  { %v1229_v18 = vpop.f32.mrf.mxu1  ;;  %v3404_v58 = vpop.f32.mrf.mxu0 }
 0xa7f   :  { %1323 = vrot.lane.b32.xlu0 %v1229_v18, %s2800_s19  ;;  %2565 = vmatprep.mubr.msk.f32.mxu0 %vm508_vm4, %v1229_v18 }
 0xa81   :  { %1321 = vrot.lane.b32.xlu1 %v2537_v41, %s2799_s18 }
 0xa83   :  { %1317 = vrot.lane.b32.xlu0 %v2537_v41, %s2801_s20 }
 0xa85   :  { %1319 = vrot.lane.b32.xlu1 %v1229_v18, %s2799_s18 }
 0xa89   :  { %1315 = vrot.lane.b32.xlu1 %v1229_v18, %s2801_s20 }
 0xaef   :  { %v1326_v42 = vpop.permute.xlu1 %1325 }
 0xaf0   :  { %1361 = vrot.lane.b32.xlu0 %v1326_v42, %s2802_s21 }
 0xaf1   :  { %v1324_v43 = vpop.permute.xlu0 %1323 }
 0xaf2   :  { %1359 = vrot.lane.b32.xlu1 %v1324_v43, %s2802_s21 }
 0xaf3   :  { %v1322_v44 = vpop.permute.xlu1 %1321 }
 0xaf4   :  { %1357 = vrot.lane.b32.xlu0 %v1322_v44, %s2802_s21 }
 0xaf5   :  { %v1318_v47 = vpop.permute.xlu0 %1317 }
 0xaf7   :  { %v1320_v48 = vpop.permute.xlu1 %1319 }
 0xaf8   :  { %1355 = vrot.lane.b32.xlu1 %v1320_v48, %s2802_s21  ;;  %1353 = vrot.lane.b32.xlu0 %v1318_v47, %s2802_s21 }
 0xafb   :  { %v1316_v49 = vpop.permute.xlu1 %1315 }
 0xafc   :  { %1351 = vrot.lane.b32.xlu1 %v1316_v49, %s2802_s21  ;;  %1349 = vrot.lane.b32.xlu0 %v2537_v41, %s2802_s21 }
 0xb00   :  { %1347 = vrot.lane.b32.xlu1 %v1229_v18, %s2802_s21 }
 0xb62   :  { %v1362_v63 = vpop.permute.xlu0 %1361 }
 0xb63   :  { %2549 = vmatprep.subr.msk.mxu0 %vm508_vm4, %v1362_v63 }
 0xb64   :  { %v1360_v0 = vpop.permute.xlu1 %1359  ;;  %2550 = vmatpush3.xpose.msk.msra.mxu0 %vm508_vm4, %v1362_v63 }
 0xb65   :  { %2551 = vmatprep.subr.msk.mxu0 %vm508_vm4, %v1360_v0 }
 0xb66   :  { %v1358_v50 = vpop.permute.xlu0 %1357 }
 0xb68   :  { %2552 = vmatpush3.xpose.msk.msra.mxu0 %vm508_vm4, %v1360_v0 }
 0xb69   :  { %2553 = vmatprep.subr.msk.mxu0 %vm508_vm4, %v1358_v50 }
 0xb6a   :  { %v1356_v51 = vpop.permute.xlu1 %1355  ;;  %v1354_v54 = vpop.permute.xlu0 %1353 }
 0xb6c   :  { %2554 = vmatpush3.xpose.msk.msra.mxu0 %vm508_vm4, %v1358_v50 }
 0xb6d   :  { %2555 = vmatprep.subr.msk.mxu0 %vm508_vm4, %v1356_v51 }
 0xb6e   :  { %v1352_v53 = vpop.permute.xlu1 %1351  ;;  %v1350_v55 = vpop.permute.xlu0 %1349 }
 0xb70   :  { %2556 = vmatpush3.xpose.msk.msra.mxu0 %vm508_vm4, %v1356_v51 }
 0xb71   :  { %2557 = vmatprep.subr.msk.mxu0 %vm508_vm4, %v1354_v54 }
 0xb72   :  { %v1348_v56 = vpop.permute.xlu1 %1347 }
 0xb74   :  { %2558 = vmatpush3.xpose.msk.msra.mxu0 %vm508_vm4, %v1354_v54 }
 0xb75   :  { %2559 = vmatprep.subr.msk.mxu0 %vm508_vm4, %v1352_v53 }
 0xb78   :  { %2560 = vmatpush3.xpose.msk.msra.mxu0 %vm508_vm4, %v1352_v53 }
 0xb79   :  { %2561 = vmatprep.subr.msk.mxu0 %vm508_vm4, %v1350_v55 }
 0xb7c   :  { %2562 = vmatpush3.xpose.msk.msra.mxu0 %vm508_vm4, %v1350_v55 }
 0xb7d   :  { %2563 = vmatprep.subr.msk.mxu0 %vm508_vm4, %v1348_v56 }
 0xb80   :  { %2564 = vmatpush3.xpose.msk.msra.mxu0 %vm508_vm4, %v1348_v56 }
 0xb83   :  { %2566 = vmatmul.mubr.msk.f32.vlgmr.msra.gmra.mxu0 %vm508_vm4, %v2537_v41 }
 0xb84   :  { %2568 = vmatprep.mubr.msk.f32.mxu0 %vm508_vm4, %v1316_v49 }
 0xb87   :  { %2569 = vmatmul.mubr.msk.f32.gmra.mxu0 %vm508_vm4, %v1318_v47 }
 0xb88   :  { %2571 = vmatprep.mubr.msk.f32.mxu0 %vm508_vm4, %v1320_v48 }
 0xb8b   :  { %2572 = vmatmul.mubr.msk.f32.gmra.mxu0 %vm508_vm4, %v1322_v44 }
 0xb8c   :  { %2574 = vmatprep.mubr.msk.f32.mxu0 %vm508_vm4, %v1324_v43 }
 0xb8f   :  { %2575 = vmatmul.mubr.msk.f32.gmra.mxu0 %vm508_vm4, %v1326_v42 }
 0xc43   :  { %v2567_v59 = vpop.f32.mrf.mxu0 }
 0xc44   :  { %v1467_v60 = vadd.f32 %v2567_v59, %v3105_v23 }
 0xc45   :  { %v1461_v61 = vpop.f32.mrf.mxu0 }
 0xc46   :  { %v1462_v62 = vadd.f32 %v1461_v61, %v3110_v25  ;;  %v1503_v1 = vsel %vm646_vm11, %v1467_v60, -inf }
 0xc47   :  { %1504 = vmax.xlane.f32.xlu1 %v1503_v1  ;;  %v2570_v3 = vpop.f32.mrf.mxu0 }
 0xc48   :  { %v1500_v4 = vsel %vm646_vm11, %v1462_v62, -inf  ;;  %v1477_v8 = vadd.f32 %v2570_v3, %v3124_v33 }
 0xc49   :  { %v1471_v5 = vpop.f32.mrf.mxu0  ;;  %1501 = vmax.xlane.f32.xlu0 %v1500_v4 }
 0xc4a   :  { %v1472_v6 = vadd.f32 %v1471_v5, %v3118_v31  ;;  %v1509_v22 = vsel %vm646_vm11, %v1477_v8, -inf }
 0xc4b   :  { %v2573_v7 = vpop.f32.mrf.mxu0 }
 0xc4c   :  { %v1506_v21 = vsel %vm646_vm11, %v1472_v6, -inf  ;;  %v1487_v25 = vadd.f32 %v2573_v7, %v3137_v40 }
 0xc4d   :  { %v1481_v9 = vpop.f32.mrf.mxu0  ;;  %1507 = vmax.xlane.f32.xlu0 %v1506_v21 }
 0xc4e   :  { %v1482_v23 = vadd.f32 %v1481_v9, %v3130_v37  ;;  %v1515_v15 = vsel %vm646_vm11, %v1487_v25, -inf }
 0xc4f   :  { %v2576_v14 = vpop.f32.mrf.mxu0 }
 0xc50   :  { %v1512_v10 = vsel %vm646_vm11, %v1482_v23, -inf  ;;  %v1497_v31 = vadd.f32 %v2576_v14, %v3146_v46 }
 0xc51   :  { %1513 = vmax.xlane.f32.xlu1 %v1512_v10  ;;  %1510 = vmax.xlane.f32.xlu0 %v1509_v22  ;;  %v1491_v37 = vpop.f32.mrf.mxu0 }
 0xc52   :  { %v1521_v33 = vsel %vm646_vm11, %v1497_v31, -inf  ;;  %v3427_v40 = vadd.f32 %v1491_v37, %v3160_v52 }
 0xc54   :  { %v1518_v46 = vsel %vm646_vm11, %v3427_v40, -inf }
 0xc55   :  { %1516 = vmax.xlane.f32.xlu0 %v1515_v15 }
 0xc59   :  { %1522 = vmax.xlane.f32.xlu0 %v1521_v33 }
 0xc62   :  { %1341 = vrot.lane.b32.xlu1 %v3404_v58, %s2803_s14 }
 0xc6f   :  { %1343 = vrot.lane.b32.xlu0 %v3402_v57, %s2803_s14 }
 0xc73   :  { %1337 = vrot.lane.b32.xlu0 %v3402_v57, %s2804_s15 }
 0xc86   :  { %1519 = vmax.xlane.f32.xlu1 %v1518_v46 }
 0xc97   :  { %1335 = vrot.lane.b32.xlu1 %v3404_v58, %s2804_s15 }
 0xcd0   :  { %v1505_v17 = vpop.xlane.xlu1 %1504 }
 0xcd1   :  { %v1525_v19 = vsub.f32 %v1467_v60, %v1505_v17 }
 0xcd2   :  { %v1502_v20 = vpop.xlane.xlu0 %1501 }
 0xcd3   :  { %v1534_v26 = vmul.f32 1.442695, %v1525_v19  ;;  %v1524_v27 = vsub.f32 %v1462_v62, %v1502_v20 }
 0xcd5   :  { %2713 = vpow2.f32 %v1534_v26  ;;  %v1532_v28 = vmul.f32 1.442695, %v1524_v27 }
 0xcd6   :  { %v1508_v29 = vpop.xlane.xlu0 %1507 }
 0xcd7   :  { %2715 = vpow2.f32 %v1532_v28  ;;  %v1526_v30 = vsub.f32 %v1472_v6, %v1508_v29 }
 0xcd9   :  { %v1536_v32 = vmul.f32 1.442695, %v1526_v30 }
 0xcda   :  { %v1514_v52 = vpop.xlane.xlu1 %1513  ;;  %v1511_v34 = vpop.xlane.xlu0 %1510 }
 0xcdb   :  { %2717 = vpow2.f32 %v1536_v32  ;;  %v1528_v36 = vsub.f32 %v1482_v23, %v1514_v52  ;;  %v1527_v41 = vsub.f32 %v1477_v8, %v1511_v34 }
 0xcdd   :  { %v1540_v18 = vmul.f32 1.442695, %v1528_v36  ;;  %v1538_v42 = vmul.f32 1.442695, %v1527_v41 }
 0xcde   :  { %v1517_v43 = vpop.xlane.xlu0 %1516  ;;  %v1342_v56 = vpop.permute.xlu1 %1341 }
 0xcdf   :  { %2719 = vpow2.f32 %v1540_v18  ;;  %v1529_v44 = vsub.f32 %v1487_v25, %v1517_v43 }
 0xce0   :  { %2721 = vpow2.f32 %v1538_v42 }
 0xce1   :  { %v1542_v47 = vmul.f32 1.442695, %v1529_v44 }
 0xce2   :  { %v3433_v48 = vpop.eup %2713  ;;  %v1523_v49 = vpop.xlane.xlu0 %1522 }
 0xce3   :  { %2723 = vpow2.f32 %v1542_v47  ;;  %v1531_v63 = vsub.f32 %v1497_v31, %v1523_v49  ;;  %v1551_v0 = vsel %vm646_vm11, %v3433_v48, 0.0 }
 0xce4   :  { %v2716_v50 = vpop.eup %2715  ;;  %1552 = vadd.xlane.f32.xlu0 %v1551_v0  ;;  %v3477_v0 = vld [vmem:[%s3609_s7 + $0x8] sm:$0xff] }
 0xce5   :  { %v1546_v51 = vmul.f32 1.442695, %v1531_v63  ;;  %v1548_v54 = vsel %vm646_vm11, %v2716_v50, 0.0 }
 0xce6   :  { %1549 = vadd.xlane.f32.xlu1 %v1548_v54  ;;  %v1344_v53 = vpop.permute.xlu0 %1343 }
 0xce7   :  { %2725 = vpow2.f32 %v1546_v51  ;;  %2577 = vmatprep.subr.mxu1 %v1344_v53 }
 0xce8   :  { %v3438_v55 = vpop.eup %2717  ;;  %2578 = vmatpush3.msra.mxu1 %v1344_v53 }
 0xce9   :  { %2579 = vmatprep.subr.mxu1 %v1342_v56  ;;  %v1554_v59 = vsel %vm646_vm11, %v3438_v55, 0.0 }
 0xcea   :  { %1555 = vadd.xlane.f32.xlu1 %v1554_v59  ;;  %2580 = vmatpush3.msra.mxu1 %v1342_v56  ;;  %v1338_v60 = vpop.permute.xlu0 %1337 }
 0xceb   :  { %2581 = vmatprep.subr.mxu1 %v1338_v60 }
 0xcec   :  { %v3442_v61 = vpop.eup %2719  ;;  %2582 = vmatpush3.msra.mxu1 %v1338_v60 }
 0xced   :  { %v2722_v62 = vpop.eup %2721  ;;  %v1560_v1 = vsel %vm646_vm11, %v3442_v61, 0.0 }
 0xcee   :  { %1561 = vadd.xlane.f32.xlu1 %v1560_v1  ;;  %v1557_v3 = vsel %vm646_vm11, %v2722_v62, 0.0 }
 0xcef   :  { %1558 = vadd.xlane.f32.xlu0 %v1557_v3 }
 0xcf0   :  { %v2724_v4 = vpop.eup %2723 }
 0xcf1   :  { %v1563_v5 = vsel %vm646_vm11, %v2724_v4, 0.0 }
 0xcf3   :  { %1564 = vadd.xlane.f32.xlu0 %v1563_v5 }
 0xcf4   :  { %v3448_v6 = vpop.eup %2725 }
 0xcf5   :  { %v1569_v7 = vsel %vm646_vm11, %v3448_v6, 0.0 }
 0xcf6   :  { %1570 = vadd.xlane.f32.xlu1 %v1569_v7 }
 0xd09   :  { %1331 = vrot.lane.b32.xlu0 %v3402_v57, %s2802_s21 }
 0xd0f   :  { %v1520_v8 = vpop.xlane.xlu1 %1519 }
 0xd10   :  { %v1530_v21 = vsub.f32 %v3427_v40, %v1520_v8 }
 0xd12   :  { %v1544_v9 = vmul.f32 1.442695, %v1530_v21 }
 0xd13   :  { %v1336_v23 = vpop.permute.xlu1 %1335 }
 0xd14   :  { %2727 = vpow2.f32 %v1544_v9  ;;  %2583 = vmatprep.subr.mxu1 %v1336_v23 }
 0xd15   :  { %2584 = vmatpush3.msra.mxu1 %v1336_v23 }
 0xd21   :  { %v2728_v25 = vpop.eup %2727 }
 0xd22   :  { %v1566_v10 = vsel %vm646_vm11, %v2728_v25, 0.0 }
 0xd23   :  { %1567 = vadd.xlane.f32.xlu1 %v1566_v10 }
 0xd34   :  { %1329 = vrot.lane.b32.xlu1 %v3404_v58, %s2802_s21 }
 0xd6d   :  { %v1553_v14 = vpop.xlane.xlu0 %1552 }
 0xd6f   :  { %v1550_v22 = vpop.xlane.xlu1 %1549 }
 0xd70   :  { %2729 = vrcp.f32 %v1550_v22 }
 0xd71   :  { %2731 = vrcp.f32 %v1553_v14  ;;  %v2178_v14 = vld [vmem:[%s3607_s5 + $0x38] sm:$0xff] }
 0xd73   :  { %v1556_v46 = vpop.xlane.xlu1 %1555 }
 0xd74   :  { %2733 = vrcp.f32 %v1556_v46  ;;  %v2192_v46 = vld [vmem:[%s3608_s6 + $0xe8] sm:$0xff] }
 0xd77   :  { %v1562_v17 = vpop.xlane.xlu1 %1561 }
 0xd78   :  { %v1559_v31 = vpop.xlane.xlu0 %1558 }
 0xd79   :  { %2735 = vrcp.f32 %v1559_v31  ;;  %v2177_v31 = vld [vmem:[%s3607_s5 + $0x30] sm:$0xff] }
 0xd7a   :  { %2737 = vrcp.f32 %v1562_v17  ;;  %v2191_v17 = vld [vmem:[%s3608_s6 + $0xe0] sm:$0xff] }
 0xd7c   :  { %v1565_v15 = vpop.xlane.xlu0 %1564 }
 0xd7d   :  { %v2730_v33 = vpop.eup %2729  ;;  %2739 = vrcp.f32 %v1565_v15  ;;  %v2176_v15 = vld [vmem:[%s3607_s5 + $0x28] sm:$0xff] }
 0xd7e   :  { %v1580_v37 = vmul.f32 %v2730_v33, %v2716_v50  ;;  %v2732_v27 = vpop.eup %2731  ;;  %v2175_v33 = vld [vmem:[%s3607_s5 + $0x20] sm:$0xff] }
 0xd7f   :  { %v1571_v19 = vpop.xlane.xlu1 %1570  ;;  %v1581_v29 = vmul.f32 %v2732_v27, %v3433_v48  ;;  %v2187_v27 = vld [vmem:[%s3608_s6 + $0xc0] sm:$0xff] }
 0xd80   :  { %v1332_v40 = vpop.permute.xlu0 %1331  ;;  %2593 = vmatprep.mubr.msk.f32.mxu1 %vm646_vm11, %v1580_v37  ;;  %v2194_v37 = vld [vmem:[%s3608_s6 + $0xf8] sm:$0xff] }
 0xd81   :  { %2585 = vmatprep.subr.mxu1 %v1332_v40  ;;  %v2734_v28 = vpop.eup %2733  ;;  %2616 = vmatprep.subr.mxu0 %v2194_v37 }
 0xd82   :  { %2586 = vmatpush3.msra.mxu1 %v1332_v40  ;;  %v1582_v32 = vmul.f32 %v2734_v28, %v3438_v55  ;;  %v1726_v55 = vrot.slane %v3477_v0, %v872_v16  ;;  %v2193_v40 = vld [vmem:[%s3608_s6 + $0xf0] sm:$0xff]  ;;  %2617 = vmatpush3.msra.mxu0 %v2194_v37  ;;  %v2186_v28 = vld [vmem:[%s3608_s6 + $0xb8] sm:$0xff]  ;;  %v1976_v37 = vld [vmem:[%s3610_s8 + $0x8] sm:$0xff] }
 0xd83   :  { %2618 = vmatprep.subr.mxu0 %v2193_v40 }
 0xd84   :  { %2619 = vmatpush3.msra.mxu0 %v2193_v40  ;;  %v1975_v40 = vld [vmem:[%s3610_s8] sm:$0xff] }
 0xd85   :  { %2620 = vmatprep.subr.mxu0 %v2192_v46 }
 0xd86   :  { %v2736_v30 = vpop.eup %2735  ;;  %2621 = vmatpush3.msra.mxu0 %v2192_v46 }
 0xd87   :  { %v2738_v52 = vpop.eup %2737  ;;  %v1583_v34 = vmul.f32 %v2736_v30, %v2722_v62  ;;  %2622 = vmatprep.subr.mxu0 %v2191_v17  ;;  %v2184_v30 = vld [vmem:[%s3608_s6 + $0xa8] sm:$0xff] }
 0xd88   :  { %v1584_v41 = vmul.f32 %v2738_v52, %v3442_v61  ;;  %2623 = vmatpush3.msra.mxu0 %v2191_v17 }
 0xd8a   :  { %v2740_v36 = vpop.eup %2739 }
 0xdac   :  { %v1568_v20 = vpop.xlane.xlu1 %1567 }
 0xdad   :  { %2741 = vrcp.f32 %v1568_v20  ;;  %v2189_v20 = vld [vmem:[%s3608_s6 + $0xd0] sm:$0xff] }
 0xdae   :  { %2743 = vrcp.f32 %v1571_v19  ;;  %v2190_v19 = vld [vmem:[%s3608_s6 + $0xd8] sm:$0xff] }
 0xdaf   :  { %2624 = vmatprep.subr.mxu0 %v2190_v19 }
 0xdb0   :  { %v1330_v26 = vpop.permute.xlu1 %1329  ;;  %2625 = vmatpush3.msra.mxu0 %v2190_v19 }
 0xdb1   :  { %2587 = vmatprep.subr.mxu1 %v1330_v26  ;;  %2626 = vmatprep.subr.mxu0 %v2189_v20 }
 0xdb2   :  { %2588 = vmatpush3.msra.mxu1 %v1330_v26  ;;  %v2188_v26 = vld [vmem:[%s3608_s6 + $0xc8] sm:$0xff]  ;;  %2627 = vmatpush3.msra.mxu0 %v2189_v20 }
 0xdb3   :  { %2589 = vmatprep.subr.mxu1 %v3402_v57  ;;  %2628 = vmatprep.subr.mxu0 %v2188_v26 }
 0xdb4   :  { %2590 = vmatpush3.msra.mxu1 %v3402_v57  ;;  %v1585_v57 = vmul.f32 %v2740_v36, %v2724_v4  ;;  %2629 = vmatpush3.msra.mxu0 %v2188_v26 }
 0xdb5   :  { %2591 = vmatprep.subr.mxu1 %v3404_v58  ;;  %2630 = vmatprep.subr.mxu0 %v2187_v27 }
 0xdb6   :  { %2592 = vmatpush3.msra.mxu1 %v3404_v58  ;;  %2631 = vmatpush3.msra.mxu0 %v2187_v27 }
 0xdb7   :  { %2594 = vmatmul.mubr.msk.f32.vlgmr.msra.gmra.mxu1 %vm646_vm11, %v1581_v29  ;;  %2605 = vmatprep.subr.mxu1 %v2178_v14  ;;  %v2185_v29 = vld [vmem:[%s3608_s6 + $0xb0] sm:$0xff] }
 0xdb8   :  { %2596 = vmatprep.mubr.msk.f32.mxu1 %vm646_vm11, %v1582_v32  ;;  %2606 = vmatpush3.msra.mxu1 %v2178_v14  ;;  %v2183_v32 = vld [vmem:[%s3608_s6 + $0xa0] sm:$0xff] }
 0xdb9   :  { %2607 = vmatprep.subr.mxu1 %v2177_v31  ;;  %2632 = vmatprep.subr.mxu0 %v2186_v28 }
 0xdba   :  { %v2742_v18 = vpop.eup %2741  ;;  %2608 = vmatpush3.msra.mxu1 %v2177_v31  ;;  %2633 = vmatpush3.msra.mxu0 %v2186_v28 }
 0xdbb   :  { %2597 = vmatmul.mubr.msk.f32.gmra.mxu1 %vm646_vm11, %v1583_v34  ;;  %v2744_v42 = vpop.eup %2743  ;;  %v1586_v43 = vmul.f32 %v2742_v18, %v2728_v25  ;;  %2609 = vmatprep.subr.mxu1 %v2176_v15 }
 0xdbc   :  { %2599 = vmatprep.mubr.msk.f32.mxu1 %vm646_vm11, %v1584_v41  ;;  %v1587_v58 = vmul.f32 %v2744_v42, %v3448_v6  ;;  %2610 = vmatpush3.msra.mxu1 %v2176_v15  ;;  %v1760_v42 = vrot.slane %v3477_v0, %v907_v11  ;;  %v2182_v11 = vld [vmem:[%s3608_s6 + $0x98] sm:$0xff] }
 0xdbd   :  { %2611 = vmatprep.subr.mxu1 %v2175_v33  ;;  %2634 = vmatprep.subr.mxu0 %v2185_v29  ;;  %v1978_v15 = vld [vmem:[%s3610_s8 + $0x18] sm:$0xff] }
 0xdbe   :  { %2612 = vmatpush3.msra.mxu1 %v2175_v33  ;;  %2635 = vmatpush3.msra.mxu0 %v2185_v29  ;;  %v1977_v33 = vld [vmem:[%s3610_s8 + $0x10] sm:$0xff]  ;;  %v1966_v29 = vrot.slane %v3477_v0, %v1113_v24 }
 0xdbf   :  { %2600 = vmatmul.mubr.msk.f32.gmra.mxu1 %vm646_vm11, %v1585_v57  ;;  %2636 = vmatprep.subr.mxu0 %v2184_v30 }
 0xdc0   :  { %2602 = vmatprep.mubr.msk.f32.mxu1 %vm646_vm11, %v1586_v43  ;;  %2637 = vmatpush3.msra.mxu0 %v2184_v30 }
 0xdc1   :  { %2638 = vmatprep.subr.mxu0 %v2183_v32  ;;  %2651 = vmatprep.subr.mxu1 %v1978_v15 }
 0xdc2   :  { %2639 = vmatpush3.msra.mxu0 %v2183_v32 }
 0xdc3   :  { %2603 = vmatmul.mubr.msk.f32.gmra.mxu1 %vm646_vm11, %v1587_v58  ;;  %2640 = vmatprep.subr.mxu0 %v2182_v11 }
 0xdc4   :  { %2641 = vmatpush3.msra.mxu0 %v2182_v11 }
 0xe77   :  { %v2595_v44 = vpop.f32.mrf.mxu1 }
 0xe79   :  { %v1678_v47 = vpop.f32.mrf.mxu1 }
 0xe7b   :  { %v2598_v48 = vpop.f32.mrf.mxu1 }
 0xe7c   :  { %v1718_v50 = vadd.f32 %v2598_v48, %v2595_v44  ;;  %v1766_v44 = vrot.slane %v3477_v0, %v913_v12  ;;  %v2181_v12 = vld [vmem:[%s3608_s6 + $0x90] sm:$0xff] }
 0xe7d   :  { %v1688_v49 = vpop.f32.mrf.mxu1  ;;  %2642 = vmatprep.subr.mxu0 %v2181_v12 }
 0xe7e   :  { %v1717_v54 = vadd.f32 %v1688_v49, %v1678_v47  ;;  %2643 = vmatpush3.msra.mxu0 %v2181_v12 }
 0xe7f   :  { %v2601_v63 = vpop.f32.mrf.mxu1 }
 0xe80   :  { %v1720_v53 = vadd.f32 %v2601_v63, %v1718_v50 }
 0xe81   :  { %v1698_v51 = vpop.f32.mrf.mxu1 }
 0xe82   :  { %v1719_v59 = vadd.f32 %v1717_v54, %v1698_v51  ;;  %v2180_v54 = vld [vmem:[%s3608_s6 + $0x88] sm:$0xff] }
 0xe83   :  { %v2604_v56 = vpop.f32.mrf.mxu1  ;;  %2644 = vmatprep.subr.mxu0 %v2180_v54 }
 0xe84   :  { %v1722_v60 = vadd.f32 %v2604_v56, %v1720_v53  ;;  %v2179_v53 = vld [vmem:[%s3608_s6 + $0x80] sm:$0xff]  ;;  %2645 = vmatpush3.msra.mxu0 %v2180_v54 }
 0xe85   :  { %v1708_v61 = vpop.f32.mrf.mxu1  ;;  %2646 = vmatprep.subr.mxu0 %v2179_v53 }
 0xe86   :  { %v1728_v62 = vadd.f32 %v1726_v55, %v1722_v60  ;;  %v1721_v1 = vadd.f32 %v1719_v59, %v1708_v61  ;;  %2647 = vmatpush3.msra.mxu0 %v2179_v53 }
 0xe88   :  { %v1727_v3 = vadd.f32 %v1726_v55, %v1721_v1  ;;  %v1730_v4 = vadd.f32 %v1728_v62, %v3354_v39  ;;  %v1772_v55 = vrot.slane %v3477_v0, %v919_v35 }
 0xe8a   :  { %v1734_v5 = vsel %vm301_vm7, %v1730_v4, 0.0  ;;  %v1729_v6 = vadd.f32 %v1727_v3, %v3352_v38  ;;  %v1859_v3 = vrot.slane %v3477_v0, %v1006_v45 }
 0xe8b   :  { %1735 = vadd.xlane.f32.xlu1 %v1734_v5 }
 0xe8c   :  { %v1731_v7 = vsel %vm301_vm7, %v1729_v6, 0.0 }
 0xe8d   :  { %1732 = vadd.xlane.f32.xlu0 %v1731_v7 }
 0xf14   :  { %v1736_v8 = vpop.xlane.xlu1 %1735 }
 0xf15   :  { %v1738_v21 = vmul.f32 0.03125, %v1736_v8 }
 0xf16   :  { %v1733_v16 = vpop.xlane.xlu0 %1732 }
 0xf17   :  { %v1737_v9 = vmul.f32 0.03125, %v1733_v16  ;;  %v3486_v23 = vsub.f32 %v1730_v4, %v1738_v21 }
 0xf19   :  { %v3488_v25 = vsub.f32 %v1729_v6, %v1737_v9  ;;  %v1742_v38 = vmul.f32 %v3486_v23, %v3486_v23 }
 0xf1b   :  { %v1741_v10 = vmul.f32 %v3488_v25, %v3488_v25  ;;  %v1746_v22 = vsel %vm301_vm7, %v1742_v38, 0.0 }
 0xf1d   :  { %v1743_v39 = vsel %vm301_vm7, %v1741_v10, 0.0 }
 0xf1e   :  { %1744 = vadd.xlane.f32.xlu0 %v1743_v39 }
 0xf22   :  { %1747 = vadd.xlane.f32.xlu0 %v1746_v22 }
 0xfa7   :  { %v1745_v52 = vpop.xlane.xlu0 %1744 }
 0xfa8   :  { %v1749_v34 = vmul.f32 0.03125, %v1745_v52 }
 0xfaa   :  { %v1751_v36 = vadd.f32 1e-05, %v1749_v34 }
 0xfab   :  { %v1748_v41 = vpop.xlane.xlu0 %1747 }
 0xfac   :  { %2745 = vrsqrt.f32 %v1751_v36  ;;  %v1750_v18 = vmul.f32 0.03125, %v1748_v41  ;;  %v1972_v36 = vrot.slane %v3477_v0, %v1119_v2 }
 0xfae   :  { %v1752_v57 = vadd.f32 1e-05, %v1750_v18 }
 0xfb0   :  { %2747 = vrsqrt.f32 %v1752_v57 }
 0xfb9   :  { %v2746_v43 = vpop.eup %2745 }
 0xfba   :  { %v1755_v58 = vmul.f32 %v2746_v43, %v3488_v25 }
 0xfbc   :  { %v1761_v47 = vmul.f32 %v1760_v42, %v1755_v58 }
 0xfbd   :  { %v2748_v48 = vpop.eup %2747 }
 0xfbe   :  { %v1756_v49 = vmul.f32 %v2748_v48, %v3486_v23  ;;  %v1767_v63 = vadd.f32 %v1766_v44, %v1761_v47 }
 0xfc0   :  { %v1762_v50 = vmul.f32 %v1760_v42, %v1756_v49  ;;  %2613 = vmatprep.mubr.msk.f32.mxu1 %vm301_vm7, %v1767_v63  ;;  %v2226_v42 = vld [vmem:[%s3610_s8 + $0x20] ss:$0 sm:$0xff]  ;;  %s2805_s8 = smov [#allocation5]  }
 0xfc1   :  { %s2092_s17 = sshll.u32 %s2805_s8, 4  ;;  %s2093_s17 = int_to_ptr.vmem [resolvable:$true] %s2092_s17 }
 0xfc2   :  { %v1768_v51 = vadd.f32 %v1766_v44, %v1762_v50  ;;  %s2773_s2 = scalar_lea.vmem %s2093_s17, 256  ;;  %p2778_p6 = scmp.lt.s32.totalorder %s2093_s17, %s2093_s17 }
 0xfc3   :  { %p2774_p5 = scmp.ne.s32.totalorder %s2093_s17, %s2773_s2  ;;  %p2779_p7 = scmp.lt.s32.totalorder %s2773_s2, %s2773_s2 }
 0xfc4   :  { %2614 = vmatmul.mubr.msk.f32.vlgmr.msra.gmra.mxu1 %vm301_vm7, %v1768_v51 }
 0xfc5   :  { %2652 = vmatpush3.msra.mxu1 %v1978_v15  ;;  %p2780_p8 = por %p2779_p7, %p2778_p6 }
 0xfc6   :  { %2653 = vmatprep.subr.mxu1 %v1977_v33 }
 0xfc7   :  { %2654 = vmatpush3.msra.mxu1 %v1977_v33  ;;  %p2781_p9 = pnand %p2780_p8, %p2774_p5 }
 0xfc8   :  { %2655 = vmatprep.subr.mxu1 %v1976_v37 }
 0xfc9   :  { %2656 = vmatpush3.msra.mxu1 %v1976_v37 }
 0xfca   :  { %2657 = vmatprep.subr.mxu1 %v1975_v40 }
 0xfcb   :  { %2658 = vmatpush3.msra.mxu1 %v1975_v40 }
0x1084   :  { %v2615_v56 = vpop.f32.mrf.mxu1 }
0x1085   :  { %v1851_v59 = vadd.f32 %v2615_v56, %v1772_v55 }
0x1086   :  { %v1845_v60 = vpop.f32.mrf.mxu1 }
0x1087   :  { %v1846_v61 = vadd.f32 %v1845_v60, %v1772_v55  ;;  %v1855_v1 = vmax.f32 %v1851_v59, 0.0 }
0x1089   :  { %v1854_v62 = vmax.f32 %v1846_v61, 0.0 }
0x108b   :  { %2648 = vmatprep.mubr.f32.mxu0 %v1854_v62 }
0x108c   :  { %2649 = vmatmul.mubr.f32.vlgmr.msra.gmra.mxu0 %v1855_v1 }
0x114c   :  { %v2650_v4 = vpop.f32.mrf.mxu0 }
0x114d   :  { %v1932_v5 = vadd.f32 %v2650_v4, %v1859_v3 }
0x114e   :  { %v1926_v6 = vpop.f32.mrf.mxu0 }
0x114f   :  { %v1927_v7 = vadd.f32 %v1926_v6, %v1859_v3  ;;  %v1936_v8 = vadd.f32 %v1932_v5, %v1768_v51 }
0x1151   :  { %v1940_v21 = vsel %vm301_vm7, %v1936_v8, 0.0  ;;  %v1935_v35 = vadd.f32 %v1927_v7, %v1767_v63 }
0x1152   :  { %1941 = vadd.xlane.f32.xlu0 %v1940_v21 }
0x1153   :  { %v1937_v16 = vsel %vm301_vm7, %v1935_v35, 0.0 }
0x1154   :  { %1938 = vadd.xlane.f32.xlu1 %v1937_v16 }
0x11db   :  { %v1942_v9 = vpop.xlane.xlu0 %1941 }
0x11dc   :  { %v1944_v23 = vmul.f32 0.03125, %v1942_v9 }
0x11dd   :  { %v1939_v25 = vpop.xlane.xlu1 %1938 }
0x11de   :  { %v1946_v10 = vsub.f32 %v1936_v8, %v1944_v23  ;;  %v1943_v39 = vmul.f32 0.03125, %v1939_v25 }
0x11e0   :  { %v1945_v38 = vsub.f32 %v1935_v35, %v1943_v39  ;;  %v1948_v22 = vmul.f32 %v1946_v10, %v1946_v10 }
0x11e2   :  { %v1952_v45 = vsel %vm301_vm7, %v1948_v22, 0.0  ;;  %v1947_v14 = vmul.f32 %v1945_v38, %v1945_v38 }
0x11e3   :  { %1953 = vadd.xlane.f32.xlu0 %v1952_v45 }
0x11e4   :  { %v1949_v31 = vsel %vm301_vm7, %v1947_v14, 0.0 }
0x11e5   :  { %1950 = vadd.xlane.f32.xlu1 %v1949_v31 }
0x126c   :  { %v1954_v46 = vpop.xlane.xlu0 %1953 }
0x126d   :  { %v1956_v17 = vmul.f32 0.03125, %v1954_v46 }
0x126e   :  { %v1951_v19 = vpop.xlane.xlu1 %1950 }
0x126f   :  { %v1958_v20 = vadd.f32 1e-05, %v1956_v17  ;;  %v1955_v26 = vmul.f32 0.03125, %v1951_v19 }
0x1271   :  { %2749 = vrsqrt.f32 %v1958_v20  ;;  %v1957_v27 = vadd.f32 1e-05, %v1955_v26 }
0x1273   :  { %2751 = vrsqrt.f32 %v1957_v27 }
0x127e   :  { %v2750_v28 = vpop.eup %2749 }
0x127f   :  { %v1962_v30 = vmul.f32 %v2750_v28, %v1946_v10 }
0x1280   :  { %v2752_v32 = vpop.eup %2751 }
0x1281   :  { %v1961_v52 = vmul.f32 %v2752_v32, %v1945_v38  ;;  %v1968_v34 = vmul.f32 %v1966_v29, %v1962_v30 }
0x1283   :  { %v1967_v41 = vmul.f32 %v1966_v29, %v1961_v52  ;;  %v1974_v57 = vadd.f32 %v1972_v36, %v1968_v34 }
0x1285   :  { %v1973_v18 = vadd.f32 %v1972_v36, %v1967_v41 }
0x1287   :  { %2659 = vmatprep.mubr.msk.f32.mxu1 %vm301_vm7, %v1973_v18 }
0x1288   :  { %2660 = vmatmul.mubr.msk.f32.vlgmr.msra.gmra.mxu1 %vm301_vm7, %v1974_v57 }
0x1348   :  { %v2661_v24 = vpop.f32.mrf.mxu1 }
0x1349   :  { %v2062_v43 = vadd.f32 %v2661_v24, %v2226_v42 }
0x134a   :  { %v2056_v58 = vpop.f32.mrf.mxu1 }
0x134b   :  { %v2057_v44 = vadd.f32 %v2226_v42, %v2056_v58  ;;  %2067 = vmax.xlane.f32.xlu0 %v2062_v43 }
0x134d   :  { %2065 = vmax.xlane.f32.xlu1 %v2057_v44 }
0x13d4   :  { %v2068_v13 = vpop.xlane.xlu0 %2067 }
0x13d5   :  { %v2070_v47 = vsub.f32 %v2062_v43, %v2068_v13 }
0x13d6   :  { %v2066_v2 = vpop.xlane.xlu1 %2065 }
0x13d7   :  { %v2073_v0 = vmul.f32 1.442695, %v2070_v47  ;;  %v2069_v48 = vsub.f32 %v2057_v44, %v2066_v2 }
0x13d9   :  { %2753 = vpow2.f32 %v2073_v0  ;;  %v2071_v49 = vmul.f32 1.442695, %v2069_v48 }
0x13db   :  { %2755 = vpow2.f32 %v2071_v49 }
0x13e6   :  { %v2754_v63 = vpop.eup %2753 }
0x13e7   :  { %2077 = vadd.xlane.f32.xlu0 %v2754_v63 }
0x13e8   :  { %v2756_v50 = vpop.eup %2755 }
0x13e9   :  { %2075 = vadd.xlane.f32.xlu1 %v2756_v50 }
0x1470   :  { %v2078_v51 = vpop.xlane.xlu0 %2077 }
0x1471   :  { %2757 = vlog2.f32 %v2078_v51 }
0x1472   :  { %v2076_v11 = vpop.xlane.xlu1 %2075 }
0x1473   :  { %2759 = vlog2.f32 %v2076_v11 }
0x147e   :  { %v2758_v12 = vpop.eup %2757 }
0x147f   :  { %v2082_v54 = vmul.f32 0.6931472, %v2758_v12 }
0x1480   :  { %v2760_v53 = vpop.eup %2759 }
0x1481   :  { %v2084_v55 = vsub.f32 %v2070_v47, %v2082_v54  ;;  %v2080_v56 = vmul.f32 0.6931472, %v2760_v53 }
0x1483   :  { %2086 = vst [vmem:[#allocation5 + $0x8] sm:$0xff] %v2084_v55  ;;  %v2083_v59 = vsub.f32 %v2069_v48, %v2080_v56 }
0x1485   :  { %2085 = vst [vmem:[#allocation5] sm:$0xff] %v2083_v59 }
0x1486   :  { %2784 = shalt.err (!%p2781_p9)
}
0x1487   :  { %s2806_s0 = smov 128   ;;  %s2807_s22 = smov 8  }
0x1488   :  { %2098 = dma.vmem_to_hbm [thread:$0]  %s2093_s17, 256, %s3611_s9, [#allocation3], %s2806_s0, %s2806_s0, %s2807_s22  }
0x1489   :  { %2795 = dma.done.wait [#allocation3], 256  }
0x148a   :  { %2796 = vsyncadd [#allocation3], 4294967040 }
0x148b   :  { %2102 = vsyncpa [#allocation3], 1 }
0x148c   :  { %2103 = vsyncpa [#allocation4], 1 }

</bundles_post_ra>
